<compile_context>
chip_gen: v5e
topology: v5e:2x2
jax: 0.10.0
libtpu: 0.0.40
codegen_flags: <defaults>
</compile_context>

<pallas_src>
import functools
import math

import numpy as np
import jax
import jax.numpy as jnp
from jax.experimental import pallas as pl
from jax.experimental.pallas import tpu as pltpu


_LANE = 128          # TPU lane width
_CIN_PAD = 8         # image channels padded to a full sublane group
_UCOL_BIAS = 16      # bias column inside the packed UNet-weight slab
# row indices of the packed f32 row-parameter slab
_ROW_PE, _ROW_FC1B, _ROW_B1, _ROW_B2, _ROW_SBIAS, _ROW_SEG = 0, 1, 2, 3, 4, 8


# ----------------------------------------------------------------------------
# Fused forward kernel (single ungridded pallas_call, everything in VMEM)
# ----------------------------------------------------------------------------
def _vqa_fused_kernel(
    emb_ref,       # [B, L*D]          f32  gathered token embeddings (flat)
    keep_ref,      # [B, 128]          f32  (~mask), zero-padded to 128 lanes
    img_ref,       # [8, B*H*W]        f32  channel-major image, Cin padded
    attn_w_ref,    # [L*D, 128]        f32  per-token fc_attn weight columns
    expand_ref,    # [128, L*D]        bf16 token -> token*D lane expansion
    fc1_w_ref,     # [L*D, TFp]        bf16
    pool1_ref,     # [B*S, B*S/4]      bf16 block-diag 2x2 avg-pool (transposed)
    pool2_ref,     # [B*S/4, B*S/16]   bf16
    w1_img_ref,    # [C1+C2+C3, H1p]   bf16 image rows of fc_answer1
    w1_tx_ref,     # [TFp, H1p]        bf16 text rows of fc_answer1
    w2_ref,        # [H1p, CLSp]       bf16 fc_answer2
    rows_ref,      # [16, 256]         f32  packed row params (pe/biases/segs)
    uslab_ref,     # [64, 32]          f32  packed UNet conv weights + biases
    attn_ref,      # [B, 128]          f32  out: attention scores (lane padded)
    final_ref,     # [1, B*H*W]        f32  out: UNet final map (lane dense)
    logits_ref,    # [B, CLSp]         f32  out: answer logits (lane padded)
    *, c1, c2, c3, cin_pad, ubias_col,
):
    f32, bf16 = jnp.float32, jnp.bfloat16

    def mm(a, b):                    # MXU: bf16 operands, f32 accumulation
        return jnp.dot(a.astype(bf16), b.astype(bf16), preferred_element_type=f32)

    def mm_nt(a, b):                 # contract last dims: [M,K] x [N,K] -> [M,N]
        return jax.lax.dot_general(a.astype(bf16), b.astype(bf16),
                                   (((1,), (1,)), ((), ())),
                                   preferred_element_type=f32)

    bsz = emb_ref.shape[0]
    sp1 = pool1_ref.shape[1]         # pooled spatial extent (all batches)
    sp2 = pool2_ref.shape[1]
    cim = c1 + c2 + c3

    # ---- packed small parameters: one DMA per slab, static value slices ----
    rows = rows_ref[...]
    pe_row = rows[_ROW_PE:_ROW_PE + 1, 0:emb_ref.shape[1]]
    fc1_b = rows[_ROW_FC1B:_ROW_FC1B + 1, 0:fc1_w_ref.shape[1]]
    b1_row = rows[_ROW_B1:_ROW_B1 + 1, 0:w1_tx_ref.shape[1]]
    b2_row = rows[_ROW_B2:_ROW_B2 + 1, 0:w2_ref.shape[1]]
    s_bias = rows[_ROW_SBIAS:_ROW_SBIAS + 1, 0:attn_ref.shape[1]]
    seg_a = rows[_ROW_SEG:_ROW_SEG + bsz, 0:sp1]           # per-batch mean rows
    seg_b = rows[_ROW_SEG + bsz:_ROW_SEG + 2 * bsz, 0:sp2]

    uslab = uslab_ref[...]
    u1_w = uslab[0:c1, 0:cin_pad]
    u2_w = uslab[c1:c1 + c2, 0:c1]
    u3_w = uslab[c1 + c2:cim, 0:c2]
    uf_w = uslab[cim:cim + 1, 0:c1]
    u1_b = uslab[0:c1, ubias_col:ubias_col + 1]
    u2_b = uslab[c1:c1 + c2, ubias_col:ubias_col + 1]
    u3_b = uslab[c1 + c2:cim, ubias_col:ubias_col + 1]
    uf_b = uslab[cim:cim + 1, ubias_col:ubias_col + 1]

    # ---- text branch --------------------------------------------------------
    # TODO(synk): pos_emb / text / combined dropout run in eval mode -> identity.
    x = emb_ref[...] + pe_row                               # [B, L*D]
    # fc_attn for every token in one f32 matmul; padded lanes carry -1e30 so
    # the 128-lane softmax equals the L-lane softmax exactly.
    s = jnp.dot(x, attn_w_ref[...], preferred_element_type=f32) + s_bias
    m = jnp.max(s, axis=1, keepdims=True)
    e = jnp.exp(s - m)
    attn = (e / jnp.sum(e, axis=1, keepdims=True)) * keep_ref[...]
    attn_ref[...] = attn                                    # [B, 128] lane dense
    # broadcast each token weight across its D embedding lanes with one matmul,
    # then fc1 as a single full-K (=L*D) MXU pass (no split-K loop).
    attn_exp = mm(attn, expand_ref[...])                    # [B, L*D]
    tfeat = mm(x * attn_exp, fc1_w_ref[...]) + fc1_b        # [B, TFp]

    # ---- image branch (stand-in UNet), channel-major [C, spatial] ----------
    # TODO(synk): the real UNet is an injected external module; this is a
    # deterministic pointwise-conv stand-in with the same output interface.
    img = img_ref[...]                                      # [8, B*S]
    h1 = jnp.maximum(mm(u1_w, img) + u1_b, 0.0)             # [C1, B*S]
    final_ref[...] = mm(uf_w, h1) + uf_b                    # [1, B*S] lane dense
    p1 = mm(h1, pool1_ref[...])                             # [C1, B*S/4]
    h2 = jnp.maximum(mm(u2_w, p1) + u2_b, 0.0)              # [C2, B*S/4]
    p2 = mm(h2, pool2_ref[...])                             # [C2, B*S/16]
    h3 = jnp.maximum(mm(u3_w, p2) + u3_b, 0.0)              # [C3, B*S/16]
    # global average pools as segment-mean matmuls (mean of the 2x2-pooled map
    # equals the mean of the full map), producing batch-major [B, C] directly.
    r1 = mm_nt(seg_a, p1)                                   # [B, C1]
    r2 = mm_nt(seg_b, p2)                                   # [B, C2]
    r3 = mm_nt(seg_b, h3)                                   # [B, C3]

    # ---- combined head: split-K over concat groups (never materialized) ----
    hid = (mm(r1, w1_img_ref[0:c1, :])
           + mm(r2, w1_img_ref[c1:c1 + c2, :])
           + mm(r3, w1_img_ref[c1 + c2:cim, :])
           + mm(tfeat, w1_tx_ref[...])
           + b1_row)
    hid = jnp.maximum(hid, 0.0)                             # [B, H1p]
    logits_ref[...] = mm(hid, w2_ref[...]) + b2_row         # [B, CLSp]


# ----------------------------------------------------------------------------
# Forward wrapper: gather / layout glue in XLA, one fused pallas_call
# ----------------------------------------------------------------------------
@functools.partial(jax.jit, static_argnames=("n_answer_classes", "unet_dims"))
def vqa_forward(params, image_nchw, text, mask, n_answer_classes, unet_dims):
    bsz, cin, hh, ww = image_nchw.shape
    _, seq = text.shape
    c1, c2, c3 = unet_dims

    emb_flat = params["emb"][text].astype(jnp.float32).reshape(bsz, -1)
    keep = jnp.logical_not(mask).astype(jnp.float32)
    keep_pad = jnp.pad(keep, ((0, 0), (0, _LANE - seq)))
    img_t = jnp.transpose(image_nchw, (1, 0, 2, 3)).reshape(cin, bsz * hh * ww)
    img_t = jnp.pad(img_t, ((0, _CIN_PAD - cin), (0, 0)))

    kern = functools.partial(_vqa_fused_kernel, c1=c1, c2=c2, c3=c3,
                             cin_pad=_CIN_PAD, ubias_col=_UCOL_BIAS)
    attn_pad, final_row, logits_pad = pl.pallas_call(
        kern,
        out_shape=(
            jax.ShapeDtypeStruct((bsz, _LANE), jnp.float32),
            jax.ShapeDtypeStruct((1, bsz * hh * ww), jnp.float32),
            jax.ShapeDtypeStruct((bsz, params["w2"].shape[1]), jnp.float32),
        ),
        cost_estimate=pl.CostEstimate(
            flops=2_400_000, transcendentals=256, bytes_accessed=950_000),
        compiler_params=pltpu.CompilerParams(
            vmem_limit_bytes=32 * 1024 * 1024),
    )(emb_flat, keep_pad, img_t,
      params["attn_w"], params["expand"], params["fc1_w"],
      params["pool1"], params["pool2"],
      params["w1_img"], params["w1_tx"], params["w2"],
      params["rows"], params["uslab"])

    answer_probs = logits_pad[:, :n_answer_classes]      # strip lane padding
    attn_scores = attn_pad[:, :seq]
    final_output = final_row.reshape(bsz, 1, hh, ww)      # NCHW, C=1
    return answer_probs, attn_scores, final_output


# ----------------------------------------------------------------------------
# Parameter setup (deterministic, synthetic) + kernel-friendly preparation
# ----------------------------------------------------------------------------
def make_positional_encoding(max_len, d_model):
    pos = np.arange(max_len, dtype=np.float32)[:, None]
    div = np.exp(np.arange(0, d_model, 2, dtype=np.float32)
                 * -(math.log(10000.0) / d_model))
    pe = np.zeros((max_len, d_model), dtype=np.float32)
    pe[:, 0::2] = np.sin(pos * div)
    pe[:, 1::2] = np.cos(pos * div)
    return pe


def _linear_init(key, fan_in, fan_out):
    bound = 1.0 / math.sqrt(fan_in)
    kw, kb = jax.random.split(key)
    w = jax.random.uniform(kw, (fan_in, fan_out), jnp.float32, -bound, bound)
    b = jax.random.uniform(kb, (fan_out,), jnp.float32, -bound, bound)
    return w, b


def init_params(key, *, n_char_tokens, emb_dim, max_question_len,
                n_vqa_answer_classes, unet_features_dim, image_in_ch):
    """Raw parameters with the same logical layout as the PyTorch module."""
    text_features_dim = 255
    total = sum(unet_features_dim) + text_features_dim
    ks = jax.random.split(key, 9)
    p = {}
    p["emb"] = jax.random.normal(ks[0], (n_char_tokens, emb_dim), jnp.float32)
    p["pe"] = make_positional_encoding(max_question_len, emb_dim)
    p["fc_attn_w"], p["fc_attn_b"] = _linear_init(ks[1], emb_dim, 1)
    p["fc1_w"], p["fc1_b"] = _linear_init(
        ks[2], emb_dim * max_question_len, text_features_dim)
    # stand-in UNet params (pointwise convs)
    p["u1_w"], p["u1_b"] = _linear_init(ks[3], image_in_ch, unet_features_dim[0])
    p["u2_w"], p["u2_b"] = _linear_init(ks[4], unet_features_dim[0], unet_features_dim[1])
    p["u3_w"], p["u3_b"] = _linear_init(ks[5], unet_features_dim[1], unet_features_dim[2])
    p["uf_w"], p["uf_b"] = _linear_init(ks[6], unet_features_dim[0], 1)
    # answer head
    p["fca1_w"], p["fca1_b"] = _linear_init(ks[7], total, total // 2)
    p["fca2_w"], p["fca2_b"] = _linear_init(ks[8], total // 2, n_vqa_answer_classes)
    return p


def _round_up(x, m):
    return ((x + m - 1) // m) * m


def _make_pool_matrix(in_hw):
    """P so that (P @ x_flat) == 2x2 average pool of x (row-major H,W flatten)."""
    out_hw = in_hw // 2
    p = np.zeros((out_hw * out_hw, in_hw * in_hw), np.float32)
    for i in range(out_hw):
        for j in range(out_hw):
            for di in range(2):
                for dj in range(2):
                    p[i * out_hw + j, (2 * i + di) * in_hw + (2 * j + dj)] = 0.25
    return p


def prepare_params(raw, *, batch_size, max_question_len, unet_features_dim,
                   image_hw, image_in_ch):
    """Pad / split / pack raw params into the kernel-friendly layout."""
    bf16 = jnp.bfloat16
    B = batch_size
    L = max_question_len
    D = raw["emb"].shape[1]
    LD = L * D
    c1, c2, c3 = unet_features_dim
    cim = c1 + c2 + c3
    tf_dim = raw["fc1_w"].shape[1]                   # 255
    h1_dim = raw["fca1_w"].shape[1]                  # 155
    ncls = raw["fca2_w"].shape[1]                    # 10
    tf_pad = _round_up(tf_dim, _LANE)                # 256
    h1_pad = _round_up(h1_dim, _LANE)                # 256
    cls_pad = _round_up(ncls, _LANE)                 # 128
    S = image_hw * image_hw
    sp1, sp2 = B * (S // 4), B * (S // 16)
    assert L <= _LANE and max(c1, c2, image_in_ch) <= _UCOL_BIAS

    p = {"emb": raw["emb"]}

    # --- text branch: scattered fc_attn weight (f32 for score parity),
    #     0/1 lane-expansion matrix, zero-padded fc1 ------------------------
    wa = np.asarray(raw["fc_attn_w"])[:, 0]
    attn_w = np.zeros((LD, _LANE), np.float32)
    expand = np.zeros((_LANE, LD), np.float32)
    for l in range(L):
        attn_w[l * D:(l + 1) * D, l] = wa
        expand[l, l * D:(l + 1) * D] = 1.0
    p["attn_w"] = jnp.asarray(attn_w)
    p["expand"] = jnp.asarray(expand, bf16)
    fc1_w = np.zeros((LD, tf_pad), np.float32)
    fc1_w[:, :tf_dim] = np.asarray(raw["fc1_w"])
    p["fc1_w"] = jnp.asarray(fc1_w, bf16)

    # --- image branch: block-diagonal (over batch) 2x2 avg-pool matrices ---
    eye = np.eye(B, dtype=np.float32)
    p["pool1"] = jnp.asarray(np.kron(eye, _make_pool_matrix(image_hw).T), bf16)
    p["pool2"] = jnp.asarray(np.kron(eye, _make_pool_matrix(image_hw // 2).T), bf16)

    # --- combined head: fc_answer1 split by concat group, zero-padded ------
    w1 = np.asarray(raw["fca1_w"])
    w1_img = np.zeros((cim, h1_pad), np.float32)
    w1_img[:, :h1_dim] = w1[:cim]
    w1_tx = np.zeros((tf_pad, h1_pad), np.float32)
    w1_tx[:tf_dim, :h1_dim] = w1[cim:]
    w2 = np.zeros((h1_pad, cls_pad), np.float32)
    w2[:h1_dim, :ncls] = np.asarray(raw["fca2_w"])
    p["w1_img"] = jnp.asarray(w1_img, bf16)
    p["w1_tx"] = jnp.asarray(w1_tx, bf16)
    p["w2"] = jnp.asarray(w2, bf16)

    # --- packed f32 row-parameter slab --------------------------------------
    width = _round_up(max(LD, tf_pad, h1_pad, _LANE, sp1), _LANE)
    rows = np.zeros((_round_up(_ROW_SEG + 2 * B, 8), width), np.float32)
    rows[_ROW_PE, :LD] = np.asarray(raw["pe"])[:L].reshape(-1)
    rows[_ROW_FC1B, :tf_dim] = np.asarray(raw["fc1_b"])
    rows[_ROW_B1, :h1_dim] = np.asarray(raw["fca1_b"])
    rows[_ROW_B2, :ncls] = np.asarray(raw["fca2_b"])
    rows[_ROW_SBIAS, :_LANE] = -1e30                    # softmax lane padding
    rows[_ROW_SBIAS, :L] = float(np.asarray(raw["fc_attn_b"])[0])
    rows[_ROW_SEG:_ROW_SEG + B, :sp1] = np.kron(
        eye, np.full((1, S // 4), 4.0 / S, np.float32))
    rows[_ROW_SEG + B:_ROW_SEG + 2 * B, :sp2] = np.kron(
        eye, np.full((1, S // 16), 16.0 / S, np.float32))
    p["rows"] = jnp.asarray(rows)

    # --- packed f32 UNet weight/bias slab (stand-in pointwise convs) --------
    uslab = np.zeros((_round_up(cim + 1, 8), 32), np.float32)
    uslab[0:c1, 0:image_in_ch] = np.asarray(raw["u1_w"]).T
    uslab[c1:c1 + c2, 0:c1] = np.asarray(raw["u2_w"]).T
    uslab[c1 + c2:cim, 0:c2] = np.asarray(raw["u3_w"]).T
    uslab[cim, 0:c1] = np.asarray(raw["uf_w"])[:, 0]
    uslab[0:c1, _UCOL_BIAS] = np.asarray(raw["u1_b"])
    uslab[c1:c1 + c2, _UCOL_BIAS] = np.asarray(raw["u2_b"])
    uslab[c1 + c2:cim, _UCOL_BIAS] = np.asarray(raw["u3_b"])
    uslab[cim, _UCOL_BIAS] = float(np.asarray(raw["uf_b"])[0])
    p["uslab"] = jnp.asarray(uslab)
    return p


# ----------------------------------------------------------------------------
if __name__ == "__main__":
    B = 2
    n_char_tokens = 30
    emb_dim = 32
    max_question_len = 8
    n_vqa_answer_classes = 10
    unet_features_dim = (8, 16, 32)       # -> image_features_dim = 56
    image_in_ch, H, W = 3, 16, 16         # pool dims (16, 8, 4) == feature spatial

    key = jax.random.PRNGKey(0)
    kp, ki, kt = jax.random.split(key, 3)

    raw_params = init_params(
        kp,
        n_char_tokens=n_char_tokens,
        emb_dim=emb_dim,
        max_question_len=max_question_len,
        n_vqa_answer_classes=n_vqa_answer_classes,
        unet_features_dim=unet_features_dim,
        image_in_ch=image_in_ch,
    )
    params = prepare_params(
        raw_params,
        batch_size=B,
        max_question_len=max_question_len,
        unet_features_dim=unet_features_dim,
        image_hw=H,
        image_in_ch=image_in_ch,
    )

    image = jax.random.normal(ki, (B, image_in_ch, H, W), jnp.float32)
    text = jax.random.randint(kt, (B, max_question_len), 0, n_char_tokens)
    lengths = jnp.array([5, 7])
    mask = jnp.arange(max_question_len)[None, :] >= lengths[:, None]  # True = pad

    answer_probs, attn_scores, final_output = vqa_forward(
        params, image, text, mask,
        n_answer_classes=n_vqa_answer_classes, unet_dims=unet_features_dim)
    jax.block_until_ready((answer_probs, attn_scores, final_output))

    assert answer_probs.shape == (B, n_vqa_answer_classes)
    assert attn_scores.shape == (B, max_question_len)
    assert final_output.shape == (B, 1, H, W)
    assert bool(jnp.all(jnp.isfinite(answer_probs)))
    assert bool(jnp.all(jnp.isfinite(attn_scores)))
    assert bool(jnp.all(jnp.isfinite(final_output)))
    print("KERNEL_OK")
</pallas_src>

<mosaic_0001>
module attributes {stable_mosaic.version = 11 : i64} {
  func.func @_vqa_fused_kernel(%arg0: memref<2x256xf32, #tpu.memory_space<vmem>>, %arg1: memref<2x128xf32, #tpu.memory_space<vmem>>, %arg2: memref<8x512xf32, #tpu.memory_space<vmem>>, %arg3: memref<256x128xf32, #tpu.memory_space<vmem>>, %arg4: memref<128x256xbf16, #tpu.memory_space<vmem>>, %arg5: memref<256x256xbf16, #tpu.memory_space<vmem>>, %arg6: memref<512x128xbf16, #tpu.memory_space<vmem>>, %arg7: memref<128x32xbf16, #tpu.memory_space<vmem>>, %arg8: memref<56x256xbf16, #tpu.memory_space<vmem>>, %arg9: memref<256x256xbf16, #tpu.memory_space<vmem>>, %arg10: memref<256x128xbf16, #tpu.memory_space<vmem>>, %arg11: memref<16x256xf32, #tpu.memory_space<vmem>>, %arg12: memref<64x32xf32, #tpu.memory_space<vmem>>, %arg13: memref<2x128xf32, #tpu.memory_space<vmem>>, %arg14: memref<1x512xf32, #tpu.memory_space<vmem>>, %arg15: memref<2x128xf32, #tpu.memory_space<vmem>>) attributes {dimension_semantics = [], scalar_prefetch = 0 : i64, scratch_operands = 0 : i64, tpu.core_type = #tpu.core_type<tc>} {
    %c0 = arith.constant 0 : index
    %c0_0 = arith.constant 0 : index
    %0 = vector.load %arg11[%c0, %c0_0] : memref<16x256xf32, #tpu.memory_space<vmem>>, vector<16x256xf32>
    %1 = vector.extract_strided_slice %0 {offsets = [0, 0], sizes = [1, 256], strides = [1, 1]} : vector<16x256xf32> to vector<1x256xf32>
    %2 = vector.extract_strided_slice %0 {offsets = [1, 0], sizes = [1, 256], strides = [1, 1]} : vector<16x256xf32> to vector<1x256xf32>
    %3 = vector.extract_strided_slice %0 {offsets = [2, 0], sizes = [1, 256], strides = [1, 1]} : vector<16x256xf32> to vector<1x256xf32>
    %4 = vector.extract_strided_slice %0 {offsets = [3, 0], sizes = [1, 128], strides = [1, 1]} : vector<16x256xf32> to vector<1x128xf32>
    %5 = vector.extract_strided_slice %0 {offsets = [4, 0], sizes = [1, 128], strides = [1, 1]} : vector<16x256xf32> to vector<1x128xf32>
    %6 = vector.extract_strided_slice %0 {offsets = [8, 0], sizes = [2, 128], strides = [1, 1]} : vector<16x256xf32> to vector<2x128xf32>
    %7 = vector.extract_strided_slice %0 {offsets = [10, 0], sizes = [2, 32], strides = [1, 1]} : vector<16x256xf32> to vector<2x32xf32>
    %c0_1 = arith.constant 0 : index
    %c0_2 = arith.constant 0 : index
    %8 = vector.load %arg12[%c0_1, %c0_2] : memref<64x32xf32, #tpu.memory_space<vmem>>, vector<64x32xf32>
    %9 = vector.extract_strided_slice %8 {offsets = [0, 0], sizes = [8, 8], strides = [1, 1]} : vector<64x32xf32> to vector<8x8xf32>
    %10 = vector.extract_strided_slice %8 {offsets = [8, 0], sizes = [16, 8], strides = [1, 1]} : vector<64x32xf32> to vector<16x8xf32>
    %11 = vector.extract_strided_slice %8 {offsets = [24, 0], sizes = [32, 16], strides = [1, 1]} : vector<64x32xf32> to vector<32x16xf32>
    %12 = vector.extract_strided_slice %8 {offsets = [56, 0], sizes = [1, 8], strides = [1, 1]} : vector<64x32xf32> to vector<1x8xf32>
    %13 = vector.extract_strided_slice %8 {offsets = [0, 16], sizes = [8, 1], strides = [1, 1]} : vector<64x32xf32> to vector<8x1xf32>
    %14 = vector.extract_strided_slice %8 {offsets = [8, 16], sizes = [16, 1], strides = [1, 1]} : vector<64x32xf32> to vector<16x1xf32>
    %15 = vector.extract_strided_slice %8 {offsets = [24, 16], sizes = [32, 1], strides = [1, 1]} : vector<64x32xf32> to vector<32x1xf32>
    %16 = vector.extract_strided_slice %8 {offsets = [56, 16], sizes = [1, 1], strides = [1, 1]} : vector<64x32xf32> to vector<1x1xf32>
    %c0_3 = arith.constant 0 : index
    %c0_4 = arith.constant 0 : index
    %17 = vector.load %arg0[%c0_3, %c0_4] : memref<2x256xf32, #tpu.memory_space<vmem>>, vector<2x256xf32>
    %18 = vector.broadcast %1 : vector<1x256xf32> to vector<2x256xf32>
    %19 = arith.addf %17, %18 : vector<2x256xf32>
    %c0_5 = arith.constant 0 : index
    %c0_6 = arith.constant 0 : index
    %20 = vector.load %arg3[%c0_5, %c0_6] : memref<256x128xf32, #tpu.memory_space<vmem>>, vector<256x128xf32>
    %cst = arith.constant dense<0.000000e+00> : vector<2x128xf32>
    %21 = tpu.matmul %19, %20, %cst {dimension_numbers = #tpu.dot_dimension_numbers<[1], [0], [0], [1], [0, 0, 1, 1], [], []>} : vector<2x256xf32>, vector<256x128xf32>, vector<2x128xf32> -> vector<2x128xf32>
    %22 = vector.broadcast %5 : vector<1x128xf32> to vector<2x128xf32>
    %23 = arith.addf %21, %22 : vector<2x128xf32>
    %cst_7 = arith.constant dense<0xFF800000> : vector<2xf32>
    %24 = vector.multi_reduction <maximumf>, %23, %cst_7 [1] : vector<2x128xf32> to vector<2xf32>
    %25 = vector.shape_cast %24 : vector<2xf32> to vector<2x1xf32>
    %26 = vector.broadcast %25 : vector<2x1xf32> to vector<2x128xf32>
    %27 = arith.subf %23, %26 : vector<2x128xf32>
    %28 = math.exp %27 : vector<2x128xf32>
    %cst_8 = arith.constant dense<0.000000e+00> : vector<2xf32>
    %29 = vector.multi_reduction <add>, %28, %cst_8 [1] : vector<2x128xf32> to vector<2xf32>
    %30 = vector.shape_cast %29 : vector<2xf32> to vector<2x1xf32>
    %31 = vector.broadcast %30 : vector<2x1xf32> to vector<2x128xf32>
    %32 = arith.divf %28, %31 : vector<2x128xf32>
    %c0_9 = arith.constant 0 : index
    %c0_10 = arith.constant 0 : index
    %33 = vector.load %arg1[%c0_9, %c0_10] : memref<2x128xf32, #tpu.memory_space<vmem>>, vector<2x128xf32>
    %34 = arith.mulf %32, %33 : vector<2x128xf32>
    %c0_11 = arith.constant 0 : index
    %c0_12 = arith.constant 0 : index
    %35 = vector.load %arg13[%c0_11, %c0_12] : memref<2x128xf32, #tpu.memory_space<vmem>>, vector<2x128xf32>
    tpu.vector_store %arg13[%c0_11, %c0_12], %34 {strides = array<i32>} : memref<2x128xf32, #tpu.memory_space<vmem>>, vector<2x128xf32>,
    %c0_13 = arith.constant 0 : index
    %c0_14 = arith.constant 0 : index
    %36 = vector.load %arg4[%c0_13, %c0_14] : memref<128x256xbf16, #tpu.memory_space<vmem>>, vector<128x256xbf16>
    %37 = arith.truncf %34 : vector<2x128xf32> to vector<2x128xbf16>
    %cst_15 = arith.constant dense<0.000000e+00> : vector<2x256xf32>
    %38 = tpu.matmul %37, %36, %cst_15 {dimension_numbers = #tpu.dot_dimension_numbers<[1], [0], [0], [1], [0, 0, 1, 1], [], []>} : vector<2x128xbf16>, vector<128x256xbf16>, vector<2x256xf32> -> vector<2x256xf32>
    %39 = arith.mulf %19, %38 : vector<2x256xf32>
    %c0_16 = arith.constant 0 : index
    %c0_17 = arith.constant 0 : index
    %40 = vector.load %arg5[%c0_16, %c0_17] : memref<256x256xbf16, #tpu.memory_space<vmem>>, vector<256x256xbf16>
    %41 = arith.truncf %39 : vector<2x256xf32> to vector<2x256xbf16>
    %cst_18 = arith.constant dense<0.000000e+00> : vector<2x256xf32>
    %42 = tpu.matmul %41, %40, %cst_18 {dimension_numbers = #tpu.dot_dimension_numbers<[1], [0], [0], [1], [0, 0, 1, 1], [], []>} : vector<2x256xbf16>, vector<256x256xbf16>, vector<2x256xf32> -> vector<2x256xf32>
    %43 = vector.broadcast %2 : vector<1x256xf32> to vector<2x256xf32>
    %44 = arith.addf %42, %43 : vector<2x256xf32>
    %c0_19 = arith.constant 0 : index
    %c0_20 = arith.constant 0 : index
    %45 = vector.load %arg2[%c0_19, %c0_20] : memref<8x512xf32, #tpu.memory_space<vmem>>, vector<8x512xf32>
    %46 = arith.truncf %9 : vector<8x8xf32> to vector<8x8xbf16>
    %47 = arith.truncf %45 : vector<8x512xf32> to vector<8x512xbf16>
    %cst_21 = arith.constant dense<0.000000e+00> : vector<8x512xf32>
    %48 = tpu.matmul %46, %47, %cst_21 {dimension_numbers = #tpu.dot_dimension_numbers<[1], [0], [0], [1], [0, 0, 1, 1], [], []>} : vector<8x8xbf16>, vector<8x512xbf16>, vector<8x512xf32> -> vector<8x512xf32>
    %49 = vector.broadcast %13 : vector<8x1xf32> to vector<8x512xf32>
    %50 = arith.addf %48, %49 : vector<8x512xf32>
    %cst_22 = arith.constant 0.000000e+00 : f32
    %51 = vector.broadcast %cst_22 : f32 to vector<8x512xf32>
    %52 = arith.maximumf %50, %51 : vector<8x512xf32>
    %53 = arith.truncf %12 : vector<1x8xf32> to vector<1x8xbf16>
    %54 = arith.truncf %52 : vector<8x512xf32> to vector<8x512xbf16>
    %cst_23 = arith.constant dense<0.000000e+00> : vector<1x512xf32>
    %55 = tpu.matmul %53, %54, %cst_23 {dimension_numbers = #tpu.dot_dimension_numbers<[1], [0], [0], [1], [0, 0, 1, 1], [], []>} : vector<1x8xbf16>, vector<8x512xbf16>, vector<1x512xf32> -> vector<1x512xf32>
    %56 = vector.broadcast %16 : vector<1x1xf32> to vector<1x512xf32>
    %57 = arith.addf %55, %56 : vector<1x512xf32>
    %c0_24 = arith.constant 0 : index
    %c0_25 = arith.constant 0 : index
    %58 = vector.load %arg14[%c0_24, %c0_25] : memref<1x512xf32, #tpu.memory_space<vmem>>, vector<1x512xf32>
    tpu.vector_store %arg14[%c0_24, %c0_25], %57 {strides = array<i32>} : memref<1x512xf32, #tpu.memory_space<vmem>>, vector<1x512xf32>,
    %c0_26 = arith.constant 0 : index
    %c0_27 = arith.constant 0 : index
    %59 = vector.load %arg6[%c0_26, %c0_27] : memref<512x128xbf16, #tpu.memory_space<vmem>>, vector<512x128xbf16>
    %60 = arith.truncf %52 : vector<8x512xf32> to vector<8x512xbf16>
    %cst_28 = arith.constant dense<0.000000e+00> : vector<8x128xf32>
    %61 = tpu.matmul %60, %59, %cst_28 {dimension_numbers = #tpu.dot_dimension_numbers<[1], [0], [0], [1], [0, 0, 1, 1], [], []>} : vector<8x512xbf16>, vector<512x128xbf16>, vector<8x128xf32> -> vector<8x128xf32>
    %62 = arith.truncf %10 : vector<16x8xf32> to vector<16x8xbf16>
    %63 = arith.truncf %61 : vector<8x128xf32> to vector<8x128xbf16>
    %cst_29 = arith.constant dense<0.000000e+00> : vector<16x128xf32>
    %64 = tpu.matmul %62, %63, %cst_29 {dimension_numbers = #tpu.dot_dimension_numbers<[1], [0], [0], [1], [0, 0, 1, 1], [], []>} : vector<16x8xbf16>, vector<8x128xbf16>, vector<16x128xf32> -> vector<16x128xf32>
    %65 = vector.broadcast %14 : vector<16x1xf32> to vector<16x128xf32>
    %66 = arith.addf %64, %65 : vector<16x128xf32>
    %cst_30 = arith.constant 0.000000e+00 : f32
    %67 = vector.broadcast %cst_30 : f32 to vector<16x128xf32>
    %68 = arith.maximumf %66, %67 : vector<16x128xf32>
    %c0_31 = arith.constant 0 : index
    %c0_32 = arith.constant 0 : index
    %69 = vector.load %arg7[%c0_31, %c0_32] : memref<128x32xbf16, #tpu.memory_space<vmem>>, vector<128x32xbf16>
    %70 = arith.truncf %68 : vector<16x128xf32> to vector<16x128xbf16>
    %cst_33 = arith.constant dense<0.000000e+00> : vector<16x32xf32>
    %71 = tpu.matmul %70, %69, %cst_33 {dimension_numbers = #tpu.dot_dimension_numbers<[1], [0], [0], [1], [0, 0, 1, 1], [], []>} : vector<16x128xbf16>, vector<128x32xbf16>, vector<16x32xf32> -> vector<16x32xf32>
    %72 = arith.truncf %11 : vector<32x16xf32> to vector<32x16xbf16>
    %73 = arith.truncf %71 : vector<16x32xf32> to vector<16x32xbf16>
    %cst_34 = arith.constant dense<0.000000e+00> : vector<32x32xf32>
    %74 = tpu.matmul %72, %73, %cst_34 {dimension_numbers = #tpu.dot_dimension_numbers<[1], [0], [0], [1], [0, 0, 1, 1], [], []>} : vector<32x16xbf16>, vector<16x32xbf16>, vector<32x32xf32> -> vector<32x32xf32>
    %75 = vector.broadcast %15 : vector<32x1xf32> to vector<32x32xf32>
    %76 = arith.addf %74, %75 : vector<32x32xf32>
    %cst_35 = arith.constant 0.000000e+00 : f32
    %77 = vector.broadcast %cst_35 : f32 to vector<32x32xf32>
    %78 = arith.maximumf %76, %77 : vector<32x32xf32>
    %79 = arith.truncf %6 : vector<2x128xf32> to vector<2x128xbf16>
    %80 = arith.truncf %61 : vector<8x128xf32> to vector<8x128xbf16>
    %cst_36 = arith.constant dense<0.000000e+00> : vector<2x8xf32>
    %81 = tpu.matmul %79, %80, %cst_36 {dimension_numbers = #tpu.dot_dimension_numbers<[1], [1], [0], [0], [0, 0, 1, 0], [], []>} : vector<2x128xbf16>, vector<8x128xbf16>, vector<2x8xf32> -> vector<2x8xf32>
    %82 = arith.truncf %7 : vector<2x32xf32> to vector<2x32xbf16>
    %83 = arith.truncf %71 : vector<16x32xf32> to vector<16x32xbf16>
    %cst_37 = arith.constant dense<0.000000e+00> : vector<2x16xf32>
    %84 = tpu.matmul %82, %83, %cst_37 {dimension_numbers = #tpu.dot_dimension_numbers<[1], [1], [0], [0], [0, 0, 1, 0], [], []>} : vector<2x32xbf16>, vector<16x32xbf16>, vector<2x16xf32> -> vector<2x16xf32>
    %85 = arith.truncf %7 : vector<2x32xf32> to vector<2x32xbf16>
    %86 = arith.truncf %78 : vector<32x32xf32> to vector<32x32xbf16>
    %cst_38 = arith.constant dense<0.000000e+00> : vector<2x32xf32>
    %87 = tpu.matmul %85, %86, %cst_38 {dimension_numbers = #tpu.dot_dimension_numbers<[1], [1], [0], [0], [0, 0, 1, 0], [], []>} : vector<2x32xbf16>, vector<32x32xbf16>, vector<2x32xf32> -> vector<2x32xf32>
    %c0_39 = arith.constant 0 : index
    %c0_40 = arith.constant 0 : index
    %88 = vector.load %arg8[%c0_39, %c0_40] : memref<56x256xbf16, #tpu.memory_space<vmem>>, vector<8x256xbf16>
    %89 = arith.truncf %81 : vector<2x8xf32> to vector<2x8xbf16>
    %cst_41 = arith.constant dense<0.000000e+00> : vector<2x256xf32>
    %90 = tpu.matmul %89, %88, %cst_41 {dimension_numbers = #tpu.dot_dimension_numbers<[1], [0], [0], [1], [0, 0, 1, 1], [], []>} : vector<2x8xbf16>, vector<8x256xbf16>, vector<2x256xf32> -> vector<2x256xf32>
    %c8 = arith.constant 8 : index
    %c0_42 = arith.constant 0 : index
    %91 = vector.load %arg8[%c8, %c0_42] : memref<56x256xbf16, #tpu.memory_space<vmem>>, vector<16x256xbf16>
    %92 = arith.truncf %84 : vector<2x16xf32> to vector<2x16xbf16>
    %cst_43 = arith.constant dense<0.000000e+00> : vector<2x256xf32>
    %93 = tpu.matmul %92, %91, %cst_43 {dimension_numbers = #tpu.dot_dimension_numbers<[1], [0], [0], [1], [0, 0, 1, 1], [], []>} : vector<2x16xbf16>, vector<16x256xbf16>, vector<2x256xf32> -> vector<2x256xf32>
    %94 = arith.addf %90, %93 : vector<2x256xf32>
    %c24 = arith.constant 24 : index
    %c0_44 = arith.constant 0 : index
    %95 = vector.load %arg8[%c24, %c0_44] : memref<56x256xbf16, #tpu.memory_space<vmem>>, vector<32x256xbf16>
    %96 = arith.truncf %87 : vector<2x32xf32> to vector<2x32xbf16>
    %cst_45 = arith.constant dense<0.000000e+00> : vector<2x256xf32>
    %97 = tpu.matmul %96, %95, %cst_45 {dimension_numbers = #tpu.dot_dimension_numbers<[1], [0], [0], [1], [0, 0, 1, 1], [], []>} : vector<2x32xbf16>, vector<32x256xbf16>, vector<2x256xf32> -> vector<2x256xf32>
    %98 = arith.addf %94, %97 : vector<2x256xf32>
    %c0_46 = arith.constant 0 : index
    %c0_47 = arith.constant 0 : index
    %99 = vector.load %arg9[%c0_46, %c0_47] : memref<256x256xbf16, #tpu.memory_space<vmem>>, vector<256x256xbf16>
    %100 = arith.truncf %44 : vector<2x256xf32> to vector<2x256xbf16>
    %cst_48 = arith.constant dense<0.000000e+00> : vector<2x256xf32>
    %101 = tpu.matmul %100, %99, %cst_48 {dimension_numbers = #tpu.dot_dimension_numbers<[1], [0], [0], [1], [0, 0, 1, 1], [], []>} : vector<2x256xbf16>, vector<256x256xbf16>, vector<2x256xf32> -> vector<2x256xf32>
    %102 = arith.addf %98, %101 : vector<2x256xf32>
    %103 = vector.broadcast %3 : vector<1x256xf32> to vector<2x256xf32>
    %104 = arith.addf %102, %103 : vector<2x256xf32>
    %cst_49 = arith.constant 0.000000e+00 : f32
    %105 = vector.broadcast %cst_49 : f32 to vector<2x256xf32>
    %106 = arith.maximumf %104, %105 : vector<2x256xf32>
    %c0_50 = arith.constant 0 : index
    %c0_51 = arith.constant 0 : index
    %107 = vector.load %arg10[%c0_50, %c0_51] : memref<256x128xbf16, #tpu.memory_space<vmem>>, vector<256x128xbf16>
    %108 = arith.truncf %106 : vector<2x256xf32> to vector<2x256xbf16>
    %cst_52 = arith.constant dense<0.000000e+00> : vector<2x128xf32>
    %109 = tpu.matmul %108, %107, %cst_52 {dimension_numbers = #tpu.dot_dimension_numbers<[1], [0], [0], [1], [0, 0, 1, 1], [], []>} : vector<2x256xbf16>, vector<256x128xbf16>, vector<2x128xf32> -> vector<2x128xf32>
    %110 = vector.broadcast %4 : vector<1x128xf32> to vector<2x128xf32>
    %111 = arith.addf %109, %110 : vector<2x128xf32>
    %c0_53 = arith.constant 0 : index
    %c0_54 = arith.constant 0 : index
    %112 = vector.load %arg15[%c0_53, %c0_54] : memref<2x128xf32, #tpu.memory_space<vmem>>, vector<2x128xf32>
    tpu.vector_store %arg15[%c0_53, %c0_54], %111 {strides = array<i32>} : memref<2x128xf32, #tpu.memory_space<vmem>>, vector<2x128xf32>,
    return
  }
}

</mosaic_0001>

<bundles_post_ra>
// kernel: vqa_forward.1
= control target key start
LH: loop header
LB: loop body
LE: loop exit
PB: predicated region body
PF: predicated region fallthrough
CT: control target
= control target key end

     0   :  { %21 = vsyncpa [#allocation3], 0  ;;  %s3576_s0 = inlined_call_operand.vmem [shape: f32[2,256], index: 0, kind: input, shape index: {}]   ;;  %s3577_s1 = inlined_call_operand.vmem [shape: f32[2,128], index: 1, kind: input, shape index: {}]   ;;  %s3578_s2 = inlined_call_operand.vmem [shape: f32[8,512], index: 2, kind: input, shape index: {}]   ;;  %s3579_s3 = inlined_call_operand.vmem [shape: f32[256,128], index: 3, kind: input, shape index: {}]   ;;  %s3580_s4 = inlined_call_operand.vmem [shape: bf16[128,256], index: 4, kind: input, shape index: {}]   ;;  %s3581_s5 = inlined_call_operand.vmem [shape: bf16[256,256], index: 5, kind: input, shape index: {}]   ;;  %s3582_s6 = inlined_call_operand.hbm [shape: bf16[512,128], index: 6, kind: input, shape index: {}]   ;;  %s3583_s7 = inlined_call_operand.vmem [shape: bf16[128,32], index: 7, kind: input, shape index: {}]   ;;  %s3584_s8 = inlined_call_operand.vmem [shape: bf16[56,256], index: 8, kind: input, shape index: {}]   ;;  %s3585_s9 = inlined_call_operand.hbm [shape: bf16[256,256], index: 9, kind: input, shape index: {}]   ;;  %s3586_s10 = inlined_call_operand.hbm [shape: bf16[256,128], index: 10, kind: input, shape index: {}]   ;;  %s3587_s11 = inlined_call_operand.hbm [shape: f32[16,256], index: 11, kind: input, shape index: {}]   ;;  %s3588_s12 = inlined_call_operand.vmem [shape: f32[64,32], index: 12, kind: input, shape index: {}]   ;;  %s3589_s13 = inlined_call_operand.hbm [shape: f32[2,128], index: 13, kind: output, shape index: {0}]   ;;  %s3590_s14 = inlined_call_operand.vmem [shape: f32[1,512], index: 14, kind: output, shape index: {1}]   ;;  %s3591_s15 = inlined_call_operand.hbm [shape: f32[2,128], index: 15, kind: output, shape index: {2}]  }
   0x1   :  { %22 = vsyncpa [#allocation6], 0 }
   0x2   :  { %23 = vsyncpa [#allocation9], 0 }
   0x3   :  { %24 = vsyncpa [#allocation4], 0  ;;  %s59_s20 = sshll.u32 %s3585_s9, 4  ;;  %s60_s20 = int_to_ptr.hbm [resolvable:$true] %s59_s20 }
   0x4   :  { %25 = vsyncpa [#allocation12], 0  ;;  %s2832_s21 = smov [#allocation5]   ;;  %s42_s25 = sshll.u32 %s3582_s6, 4  ;;  %s43_s25 = int_to_ptr.hbm [resolvable:$true] %s42_s25 }
   0x5   :  { %s61_s22 = sshll.u32 %s2832_s21, 4  ;;  %s2833_s26 = smov 128   ;;  %s62_s22 = int_to_ptr.vmem [resolvable:$true] %s61_s22 }
   0x6   :  { %s2834_s27 = smov 8   ;;  %s2835_s28 = smov [#allocation2]  }
   0x7   :  { %67 = dma.hbm_to_vmem [thread:$0]  %s60_s20, 4096, %s62_s22, [#allocation6], %s2833_s26, %s2833_s26, %s2834_s27  }
   0x8   :  { %s44_s29 = sshll.u32 %s2835_s28, 4  ;;  %s2836_s30 = smov 64   ;;  %s45_s29 = int_to_ptr.vmem [resolvable:$true] %s44_s29 }
   0x9   :  { %s2837_s16 = smov 4   ;;  %s72_s18 = sshll.u32 %s3586_s10, 4  ;;  %s73_s18 = int_to_ptr.hbm [resolvable:$true] %s72_s18 }
   0xa   :  { %50 = dma.hbm_to_vmem [thread:$0]  %s43_s25, 4096, %s45_s29, [#allocation3], %s2836_s30, %s2836_s30, %s2837_s16  }
   0xb   :  { %s2838_s19 = smov [#allocation7]   ;;  %s85_s24 = sshll.u32 %s3587_s11, 4  ;;  %s86_s24 = int_to_ptr.hbm [resolvable:$true] %s85_s24 }
   0xc   :  { %s74_s21 = sshll.u32 %s2838_s19, 4  ;;  %s2839_s20 = smov [#allocation8]   ;;  %s75_s21 = int_to_ptr.vmem [resolvable:$true] %s74_s21 }
   0xd   :  { %80 = dma.hbm_to_vmem [thread:$0]  %s73_s18, 2048, %s75_s21, [#allocation6], %s2836_s30, %s2836_s30, %s2837_s16  }
   0xe   :  { %s87_s22 = sshll.u32 %s2839_s20, 4  ;;  %s2840_s26 = smov 256   ;;  %s88_s22 = int_to_ptr.vmem [resolvable:$true] %s87_s22 }
   0xf   :  { %s2841_s27 = smov 16  }
  0x10   :  { %93 = dma.hbm_to_vmem [thread:$0]  %s86_s24, 512, %s88_s22, [#allocation9], %s2840_s26, %s2840_s26, %s2841_s27  }
  0x11   :  { %2822 = dma.done.wait [#allocation3], 4096  }
  0x12   :  { %2823 = vsyncadd [#allocation3], 4294963200 }
  0x13   :  { %2824 = dma.done.wait [#allocation6], 6144  }
  0x14   :  { %2825 = vsyncadd [#allocation6], 4294961152 }
  0x15   :  { %2826 = dma.done.wait [#allocation9], 512  }
  0x16   :  { %2827 = vsyncadd [#allocation9], 4294966784  ;;  %v149_v0 = vld [vmem:[%s3579_s3 + $0x78] sm:$0xff]  ;;  %v148_v1 = vld [vmem:[%s3579_s3 + $0x70] sm:$0xff]  ;;  %vm130_vm0 = vcmask 1041408   ;;  %vm641_vm5 = vcmask 1043456  }
  0x17   :  { %v165_v2 = vld [vmem:[%s3579_s3 + $0xf8] sm:$0xff]  ;;  %173 = vmatpush.msra.mxu0 %v149_v0  ;;  %v164_v3 = vld [vmem:[%s3579_s3 + $0xf0] sm:$0xff]  ;;  %v147_v4 = vld [vmem:[%s3579_s3 + $0x68] sm:$0xff]  ;;  %vm637_vm6 = vcmask 64512   ;;  %vm794_vm7 = vcmask 1040384   ;;  %vm796_vm8 = vcmask 1042434  }
  0x18   :  { %193 = vmatpush.msra.mxu1 %v165_v2  ;;  %v163_v5 = vld [vmem:[%s3579_s3 + $0xe8] sm:$0xff]  ;;  %v146_v6 = vld [vmem:[%s3579_s3 + $0x60] sm:$0xff]  ;;  %v145_v8 = vld [vmem:[%s3579_s3 + $0x58] sm:$0xff]  ;;  %vm1295_vm10 = vcmask 261120   ;;  %vm1249_vm11 = vcmask 130048   ;;  %s1895_s24 = sshll.u32 %s3589_s13, 4  ;;  %s1896_s24 = int_to_ptr.hbm [resolvable:$true] %s1895_s24 }
  0x19   :  { %174 = vmatpush.msra.mxu0 %v148_v1  ;;  %v162_v7 = vld [vmem:[%s3579_s3 + $0xe0] sm:$0xff]  ;;  %v161_v9 = vld [vmem:[%s3579_s3 + $0xd8] sm:$0xff]  ;;  %v144_v10 = vld [vmem:[%s3579_s3 + $0x50] sm:$0xff]  ;;  %s1908_s27 = sshll.u32 %s3591_s15, 4  ;;  %s1909_s27 = int_to_ptr.hbm [resolvable:$true] %s1908_s27 }
  0x1a   :  { %194 = vmatpush.msra.mxu1 %v164_v3  ;;  %v160_v11 = vld [vmem:[%s3579_s3 + $0xd0] sm:$0xff]  ;;  %v143_v12 = vld [vmem:[%s3579_s3 + $0x48] sm:$0xff]  ;;  %v142_v18 = vld [vmem:[%s3579_s3 + $0x40] sm:$0xff] }
  0x1b   :  { %175 = vmatpush.msra.mxu0 %v147_v4  ;;  %v159_v13 = vld [vmem:[%s3579_s3 + $0xc8] sm:$0xff]  ;;  %v2981_v15 = vld [vmem:[#allocation8 + $0x8] sm:$0xff]  ;;  %v158_v19 = vld [vmem:[%s3579_s3 + $0xc0] sm:$0xff] }
  0x1c   :  { %195 = vmatpush.msra.mxu1 %v163_v5  ;;  %v2979_v14 = vld [vmem:[#allocation8] sm:$0xff]  ;;  %v126_v17 = vperm.slane %v2981_v15, 0  ;;  %v124_v20 = vld [vmem:[%s3576_s0] sm:$0xf]  ;;  %v141_v22 = vld [vmem:[%s3579_s3 + $0x38] sm:$0xff] }
  0x1d   :  { %176 = vmatpush.msra.mxu0 %v146_v6  ;;  %v125_v16 = vperm.slane %v2979_v14, 0  ;;  %v157_v23 = vld [vmem:[%s3579_s3 + $0xb8] sm:$0xff]  ;;  %v140_v25 = vld [vmem:[%s3579_s3 + $0x30] sm:$0xff]  ;;  %v139_v28 = vld [vmem:[%s3579_s3 + $0x28] sm:$0xff]  ;;  %v166_v42 = vperm.slane %v2979_v14, 4 }
  0x1e   :  { %196 = vmatpush.msra.mxu1 %v162_v7  ;;  %v129_v21 = vrot.slane %v126_v17, 6  ;;  %v156_v26 = vld [vmem:[%s3579_s3 + $0xb0] sm:$0xff]  ;;  %v155_v29 = vld [vmem:[%s3579_s3 + $0xa8] sm:$0xff]  ;;  %v138_v30 = vld [vmem:[%s3579_s3 + $0x20] sm:$0xff] }
  0x1f   :  { %177 = vmatpush.msra.mxu0 %v145_v8  ;;  %v154_v31 = vld [vmem:[%s3579_s3 + $0xa0] sm:$0xff]  ;;  %v137_v32 = vld [vmem:[%s3579_s3 + $0x18] sm:$0xff]  ;;  %v136_v34 = vld [vmem:[%s3579_s3 + $0x10] sm:$0xff] }
  0x20   :  { %197 = vmatpush.msra.mxu1 %v161_v9  ;;  %v131_v24 = vsel %vm130_vm0, %v125_v16, %v129_v21  ;;  %v153_v33 = vld [vmem:[%s3579_s3 + $0x98] sm:$0xff]  ;;  %v152_v35 = vld [vmem:[%s3579_s3 + $0x90] sm:$0xff]  ;;  %v135_v36 = vld [vmem:[%s3579_s3 + $0x8] sm:$0xff] }
  0x21   :  { %178 = vmatpush.msra.mxu0 %v144_v10  ;;  %v3007_v27 = vadd.f32 %v131_v24, %v124_v20  ;;  %v151_v37 = vld [vmem:[%s3579_s3 + $0x88] sm:$0xff]  ;;  %v134_v38 = vld [vmem:[%s3579_s3] sm:$0xff]  ;;  %v1985_v48 = vld [vmem:[%s3580_s4 + $0x70] sm:$0xf] }
  0x22   :  { %198 = vmatpush.msra.mxu1 %v160_v11  ;;  %v150_v39 = vld [vmem:[%s3579_s3 + $0x80] sm:$0xff]  ;;  %v2529_v49 = vld [vmem:[%s3580_s4 + $0x74] sm:$0xf0]  ;;  %v2528_v50 = vld [vmem:[%s3580_s4 + $0x74] sm:$0xf] }
  0x23   :  { %179 = vmatpush.msra.mxu0 %v143_v12  ;;  %168 = vst [vmem:[#allocation1] ss:$4 sm:$0xff] %v3007_v27  ;;  %v1986_v51 = vor.u32 %v2529_v49, %v1985_v48  ;;  %v1987_v52 = vld [vmem:[%s3580_s4 + $0x78] sm:$0xf0]  ;;  %v1977_v53 = vld [vmem:[%s3580_s4 + $0x60] sm:$0xf] }
  0x24   :  { %199 = vmatpush.msra.mxu1 %v159_v13  ;;  %v2527_v54 = vld [vmem:[%s3580_s4 + $0x64] sm:$0xf0]  ;;  %v1990_v55 = vor.u32 %v2528_v50, %v1987_v52  ;;  %v2526_v56 = vld [vmem:[%s3580_s4 + $0x64] sm:$0xf]  ;;  %v1979_v57 = vld [vmem:[%s3580_s4 + $0x68] sm:$0xf0] }
  0x25   :  { %180 = vmatpush.msra.mxu0 %v142_v18  ;;  %337 = vmatpush.bf16.msra.mxu2 %v1986_v51  ;;  %v1978_v58 = vor.u32 %v2527_v54, %v1977_v53  ;;  %v1982_v59 = vor.u32 %v2526_v56, %v1979_v57  ;;  %v1969_v1 = vld [vmem:[%s3580_s4 + $0x50] sm:$0xf]  ;;  %v2525_v2 = vld [vmem:[%s3580_s4 + $0x54] sm:$0xf0]  ;;  %v2524_v3 = vld [vmem:[%s3580_s4 + $0x54] sm:$0xf] }
  0x26   :  { %200 = vmatpush.msra.mxu1 %v158_v19  ;;  %350 = vmatpush.bf16.msra.mxu3 %v1990_v55  ;;  %v1970_v4 = vor.u32 %v2525_v2, %v1969_v1  ;;  %v1971_v5 = vld [vmem:[%s3580_s4 + $0x58] sm:$0xf0]  ;;  %v1961_v7 = vld [vmem:[%s3580_s4 + $0x40] sm:$0xf]  ;;  %v2523_v8 = vld [vmem:[%s3580_s4 + $0x44] sm:$0xf0] }
  0x27   :  { %181 = vmatpush.msra.mxu0 %v141_v22  ;;  %v1974_v6 = vor.u32 %v2524_v3, %v1971_v5  ;;  %v2522_v9 = vld [vmem:[%s3580_s4 + $0x44] sm:$0xf]  ;;  %v1962_v10 = vor.u32 %v2523_v8, %v1961_v7  ;;  %v1963_v11 = vld [vmem:[%s3580_s4 + $0x48] sm:$0xf0]  ;;  %v1953_v13 = vld [vmem:[%s3580_s4 + $0x30] sm:$0xf] }
  0x28   :  { %201 = vmatpush.msra.mxu1 %v157_v23  ;;  %v1966_v12 = vor.u32 %v2522_v9, %v1963_v11  ;;  %v2521_v16 = vld [vmem:[%s3580_s4 + $0x34] sm:$0xf0]  ;;  %v2520_v17 = vld [vmem:[%s3580_s4 + $0x34] sm:$0xf]  ;;  %v1955_v19 = vld [vmem:[%s3580_s4 + $0x38] sm:$0xf0] }
  0x29   :  { %182 = vmatpush.msra.mxu0 %v140_v25  ;;  %338 = vmatpush.bf16.msra.mxu2 %v1978_v58  ;;  %v1954_v18 = vor.u32 %v2521_v16, %v1953_v13  ;;  %v1958_v20 = vor.u32 %v2520_v17, %v1955_v19  ;;  %v1945_v21 = vld [vmem:[%s3580_s4 + $0x20] sm:$0xf]  ;;  %v2519_v22 = vld [vmem:[%s3580_s4 + $0x24] sm:$0xf0]  ;;  %v2518_v23 = vld [vmem:[%s3580_s4 + $0x24] sm:$0xf] }
  0x2a   :  { %202 = vmatpush.msra.mxu1 %v156_v26  ;;  %v169_v40 = vld.sshfl [vmem:[#allocation1] sm:$0xff pattern:$0x73625140]  ;;  %v170_v41 = vld.sshfl [vmem:[#allocation1 + $0x8] sm:$0xff pattern:$0x73625140]  ;;  %351 = vmatpush.bf16.msra.mxu3 %v1982_v59  ;;  %v1946_v24 = vor.u32 %v2519_v22, %v1945_v21 }
  0x2b   :  { %183 = vmatpush.msra.mxu0 %v139_v28  ;;  %v1947_v25 = vld [vmem:[%s3580_s4 + $0x28] sm:$0xf0]  ;;  %v1937_v28 = vld [vmem:[%s3580_s4 + $0x10] sm:$0xf]  ;;  %v2560_v49 = vld [vmem:[%s3581_s5 + $0xf4] sm:$0xf] }
  0x2c   :  { %203 = vmatpush.msra.mxu1 %v155_v29  ;;  %v1950_v26 = vor.u32 %v2518_v23, %v1947_v25  ;;  %v2517_v29 = vld [vmem:[%s3580_s4 + $0x14] sm:$0xf0]  ;;  %v2115_v50 = vld [vmem:[%s3581_s5 + $0xf8] sm:$0xf0]  ;;  %v2041_v51 = vld [vmem:[%s3581_s5 + $0x60] sm:$0xf] }
  0x2d   :  { %184 = vmatpush.msra.mxu0 %v138_v30  ;;  %339 = vmatpush.bf16.msra.mxu2 %v1970_v4  ;;  %v2516_v30 = vld [vmem:[%s3580_s4 + $0x14] sm:$0xf]  ;;  %v2118_v52 = vor.u32 %v2560_v49, %v2115_v50  ;;  %v2543_v53 = vld [vmem:[%s3581_s5 + $0x64] sm:$0xf0]  ;;  %v2105_v54 = vld [vmem:[%s3581_s5 + $0xe0] sm:$0xf] }
  0x2e   :  { %204 = vmatpush.msra.mxu1 %v154_v31  ;;  %352 = vmatpush.bf16.msra.mxu3 %v1974_v6  ;;  %v1938_v31 = vor.u32 %v2517_v29, %v1937_v28  ;;  %v2559_v55 = vld [vmem:[%s3581_s5 + $0xe4] sm:$0xf0]  ;;  %v2042_v56 = vor.u32 %v2543_v53, %v2041_v51  ;;  %v2542_v58 = vld [vmem:[%s3581_s5 + $0x64] sm:$0xf]  ;;  %v2043_v59 = vld [vmem:[%s3581_s5 + $0x68] sm:$0xf0] }
  0x2f   :  { %185 = vmatpush.msra.mxu0 %v137_v32  ;;  %v1939_v32 = vld [vmem:[%s3580_s4 + $0x18] sm:$0xf0]  ;;  %v2106_v57 = vor.u32 %v2559_v55, %v2105_v54  ;;  %v2541_v1 = vld [vmem:[%s3581_s5 + $0x54] sm:$0xf0]  ;;  %v2097_v3 = vld [vmem:[%s3581_s5 + $0xd0] sm:$0xf] }
  0x30   :  { %205 = vmatpush.msra.mxu1 %v153_v33  ;;  %v1929_v33 = vld [vmem:[%s3580_s4] sm:$0xf]  ;;  %v2557_v4 = vld [vmem:[%s3581_s5 + $0xd4] sm:$0xf0]  ;;  %v2540_v5 = vld [vmem:[%s3581_s5 + $0x54] sm:$0xf] }
  0x31   :  { %186 = vmatpush.msra.mxu0 %v136_v34  ;;  %340 = vmatpush.bf16.msra.mxu2 %v1962_v10  ;;  %v2515_v34 = vld [vmem:[%s3580_s4 + $0x4] sm:$0xf0]  ;;  %v2035_v7 = vld [vmem:[%s3581_s5 + $0x58] sm:$0xf0]  ;;  %v2556_v8 = vld [vmem:[%s3581_s5 + $0xd4] sm:$0xf]  ;;  %v2098_v11 = vor.u32 %v2557_v4, %v2097_v3 }
  0x32   :  { %206 = vmatpush.msra.mxu1 %v152_v35  ;;  %353 = vmatpush.bf16.msra.mxu3 %v1966_v12  ;;  %v1942_v35 = vor.u32 %v2516_v30, %v1939_v32  ;;  %v2099_v9 = vld [vmem:[%s3581_s5 + $0xd8] sm:$0xf0]  ;;  %v2038_v12 = vor.u32 %v2540_v5, %v2035_v7  ;;  %v2025_v13 = vld [vmem:[%s3581_s5 + $0x40] sm:$0xf]  ;;  %v2539_v16 = vld [vmem:[%s3581_s5 + $0x44] sm:$0xf0] }
  0x33   :  { %187 = vmatpush.msra.mxu0 %v135_v36  ;;  %v2514_v36 = vld [vmem:[%s3580_s4 + $0x4] sm:$0xf]  ;;  %v2102_v17 = vor.u32 %v2556_v8, %v2099_v9  ;;  %v2555_v19 = vld [vmem:[%s3581_s5 + $0xc4] sm:$0xf0]  ;;  %v2027_v21 = vld [vmem:[%s3581_s5 + $0x48] sm:$0xf0]  ;;  %v2026_v23 = vor.u32 %v2539_v16, %v2025_v13 }
  0x34   :  { %207 = vmatpush.msra.mxu1 %v151_v37  ;;  %v1931_v37 = vld [vmem:[%s3580_s4 + $0x8] sm:$0xf0]  ;;  %v2554_v22 = vld [vmem:[%s3581_s5 + $0xc4] sm:$0xf]  ;;  %v2552_v51 = vld [vmem:[%s3581_s5 + $0xb4] sm:$0xf] }
  0x35   :  { %188 = vmatpush.msra.mxu0 %v134_v38  ;;  %341 = vmatpush.bf16.msra.mxu2 %v1954_v18  ;;  %v1930_v38 = vor.u32 %v2515_v34, %v1929_v33  ;;  %v2089_v18 = vld [vmem:[%s3581_s5 + $0xc0] sm:$0xf]  ;;  %v2535_v55 = vld [vmem:[%s3581_s5 + $0x24] sm:$0xf0]  ;;  %v2001_v3 = vld [vmem:[%s3581_s5 + $0x10] sm:$0xf] }
  0x36   :  { %208 = vmatpush.msra.mxu1 %v150_v39  ;;  %189 = vmatmul.f32.vlgmr.msra.gmra.mxu0 %v169_v40  ;;  %v1934_v39 = vor.u32 %v2514_v36, %v1931_v37  ;;  %v2049_v40 = vld [vmem:[%s3581_s5 + $0x70] sm:$0xf]  ;;  %v2090_v25 = vor.u32 %v2555_v19, %v2089_v18  ;;  %v2009_v54 = vld [vmem:[%s3581_s5 + $0x20] sm:$0xf]  ;;  %v2533_v4 = vld [vmem:[%s3581_s5 + $0x14] sm:$0xf0] }
  0x37   :  { %209 = vmatmul.f32.vlgmr.msra.gmra.mxu1 %v170_v41  ;;  %354 = vmatpush.bf16.msra.mxu3 %v1958_v20  ;;  %v2545_v41 = vld [vmem:[%s3581_s5 + $0x74] sm:$0xf0]  ;;  %v2538_v20 = vld [vmem:[%s3581_s5 + $0x44] sm:$0xf]  ;;  %v2065_v5 = vld [vmem:[%s3581_s5 + $0x90] sm:$0xf] }
  0x38   :  { %v2549_v7 = vld [vmem:[%s3581_s5 + $0x94] sm:$0xf0]  ;;  %v2532_v8 = vld [vmem:[%s3581_s5 + $0x14] sm:$0xf]  ;;  %v2003_v9 = vld [vmem:[%s3581_s5 + $0x18] sm:$0xf0] }
  0x39   :  { %342 = vmatpush.bf16.msra.mxu2 %v1946_v24  ;;  %v2091_v24 = vld [vmem:[%s3581_s5 + $0xc8] sm:$0xf0]  ;;  %v2067_v13 = vld [vmem:[%s3581_s5 + $0x98] sm:$0xf0]  ;;  %v1993_v16 = vld [vmem:[%s3581_s5] sm:$0xf] }
  0x3a   :  { %v2094_v28 = vor.u32 %v2554_v22, %v2091_v24  ;;  %v2531_v18 = vld [vmem:[%s3581_s5 + $0x4] sm:$0xf0]  ;;  %v2057_v19 = vld [vmem:[%s3581_s5 + $0x80] sm:$0xf]  ;;  %v1995_v24 = vld [vmem:[%s3581_s5 + $0x8] sm:$0xf0] }
  0x3b   :  { %355 = vmatpush.bf16.msra.mxu3 %v1950_v26  ;;  %v2030_v26 = vor.u32 %v2538_v20, %v2027_v21  ;;  %v2547_v20 = vld [vmem:[%s3581_s5 + $0x84] sm:$0xf0]  ;;  %v1994_v21 = vor.u32 %v2531_v18, %v1993_v16 }
  0x3c   :  { %v2058_v22 = vor.u32 %v2547_v20, %v2057_v19  ;;  %v2577_v20 = vld [vmem:[#allocation2 + $0x78] sm:$0xff] }
  0x3d   :  { %343 = vmatpush.bf16.msra.mxu2 %v1938_v31 }
  0x3f   :  { %356 = vmatpush.bf16.msra.mxu3 %v1942_v35 }
  0x41   :  { %344 = vmatpush.bf16.msra.mxu2 %v1930_v38 }
  0x43   :  { %357 = vmatpush.bf16.msra.mxu3 %v1934_v39  ;;  %v237_v39 = vld [vmem:[%s3577_s1] sm:$0x3] }
  0x47   :  { %610 = vmatpush.bf16.msrb.mxu3 %v2118_v52  ;;  %v2083_v52 = vld [vmem:[%s3581_s5 + $0xb8] sm:$0xf0] }
  0x48   :  { %v2086_v53 = vor.u32 %v2552_v51, %v2083_v52  ;;  %v3382_v51 = vld [vmem:[%s3588_s12 + $0x18] sm:$0xff] }
  0xb3   :  { %v190_v43 = vpop.f32.mrf.mxu0 }
  0xb4   :  { %v210_v44 = vpop.f32.mrf.mxu1  ;;  %v191_v45 = vadd.f32 %v190_v43, %v166_v42  ;;  %v2113_v42 = vld [vmem:[%s3581_s5 + $0xf0] sm:$0xf]  ;;  %v2050_v43 = vor.u32 %v2545_v41, %v2049_v40 }
  0xb6   :  { %v211_v46 = vadd.f32 %v210_v44, %v191_v45  ;;  %v2561_v44 = vld [vmem:[%s3581_s5 + $0xf4] sm:$0xf0]  ;;  %v2544_v45 = vld [vmem:[%s3581_s5 + $0x74] sm:$0xf]  ;;  %571 = vmatpush.bf16.msrb.mxu0 %v2050_v43  ;;  %v2017_v43 = vld [vmem:[%s3581_s5 + $0x30] sm:$0xf] }
  0xb8   :  { %v213_v47 = vsel %vm130_vm0, %v211_v46, -inf }
  0xb9   :  { %214 = vmax.xlane.f32.xlu0 %v213_v47  ;;  %v2114_v47 = vor.u32 %v2561_v44, %v2113_v42  ;;  %v2537_v44 = vld [vmem:[%s3581_s5 + $0x34] sm:$0xf0] }
  0xba   :  { %572 = vmatpush.bf16.msrb.mxu0 %v2042_v56  ;;  %v2073_v56 = vld [vmem:[%s3581_s5 + $0xa0] sm:$0xf] }
  0xbb   :  { %584 = vmatpush.bf16.msrb.mxu1 %v2114_v47  ;;  %v2536_v47 = vld [vmem:[%s3581_s5 + $0x34] sm:$0xf] }
  0xbf   :  { %585 = vmatpush.bf16.msrb.mxu1 %v2106_v57  ;;  %v2010_v57 = vor.u32 %v2535_v55, %v2009_v54 }
  0xc3   :  { %586 = vmatpush.bf16.msrb.mxu1 %v2098_v11  ;;  %v2006_v11 = vor.u32 %v2532_v8, %v2003_v9 }
  0xc7   :  { %587 = vmatpush.bf16.msrb.mxu1 %v2090_v25  ;;  %v2546_v25 = vld [vmem:[%s3581_s5 + $0x84] sm:$0xf] }
 0x12c   :  { %v215_v60 = vpop.xlane.xlu0 %214 }
 0x12d   :  { %v216_v61 = vsub.f32 %v211_v46, %v215_v60  ;;  %v2051_v46 = vld [vmem:[%s3581_s5 + $0x78] sm:$0xf0]  ;;  %v2558_v60 = vld [vmem:[%s3581_s5 + $0xe4] sm:$0xf] }
 0x12e   :  { %v2054_v48 = vor.u32 %v2544_v45, %v2051_v46  ;;  %v2081_v45 = vld [vmem:[%s3581_s5 + $0xb0] sm:$0xf]  ;;  %v2018_v46 = vor.u32 %v2537_v44, %v2017_v43 }
 0x12f   :  { %v217_v62 = vmul.f32 1.442695, %v216_v61  ;;  %v2046_v61 = vor.u32 %v2542_v58, %v2043_v59  ;;  %v2551_v58 = vld [vmem:[%s3581_s5 + $0xa4] sm:$0xf0]  ;;  %v2534_v59 = vld [vmem:[%s3581_s5 + $0x24] sm:$0xf] }
 0x130   :  { %597 = vmatpush.bf16.msrb.mxu2 %v2054_v48  ;;  %v2019_v48 = vld [vmem:[%s3581_s5 + $0x38] sm:$0xf0] }
 0x131   :  { %2672 = vpow2.f32 %v217_v62  ;;  %v2107_v62 = vld [vmem:[%s3581_s5 + $0xe8] sm:$0xf0]  ;;  %v2022_v50 = vor.u32 %v2536_v47, %v2019_v48  ;;  %v3371_v47 = vld [vmem:[%s3588_s12 + $0x10] sm:$0xff] }
 0x132   :  { %v2110_v2 = vor.u32 %v2558_v60, %v2107_v62  ;;  %v2011_v60 = vld [vmem:[%s3581_s5 + $0x28] sm:$0xf0] }
 0x133   :  { %v2014_v62 = vor.u32 %v2534_v59, %v2011_v60  ;;  %v409_v59 = vperm.slane %v2979_v14, 1 }
 0x134   :  { %598 = vmatpush.bf16.msrb.mxu2 %v2046_v61  ;;  %611 = vmatpush.bf16.msrb.mxu3 %v2110_v2  ;;  %v2074_v61 = vor.u32 %v2551_v58, %v2073_v56  ;;  %v123_v58 = vld [vmem:[%s3588_s12 + $0x38] sm:$0xff] }
 0x137   :  { %v3072_v63 = vpop.eup %2672 }
 0x138   :  { %v219_v0 = vsel %vm130_vm0, %v3072_v63, 0.0  ;;  %599 = vmatpush.bf16.msrb.mxu2 %v2038_v12  ;;  %612 = vmatpush.bf16.msrb.mxu3 %v2102_v17  ;;  %v2548_v12 = vld [vmem:[%s3581_s5 + $0x94] sm:$0xf] }
 0x139   :  { %220 = vadd.xlane.f32.xlu0 %v219_v0  ;;  %v2033_v0 = vld [vmem:[%s3581_s5 + $0x50] sm:$0xf]  ;;  %v2070_v17 = vor.u32 %v2548_v12, %v2067_v13 }
 0x13a   :  { %v2034_v6 = vor.u32 %v2541_v1, %v2033_v0  ;;  %v2550_v0 = vld [vmem:[%s3581_s5 + $0xa4] sm:$0xf]  ;;  %v2075_v1 = vld [vmem:[%s3581_s5 + $0xa8] sm:$0xf0] }
 0x13b   :  { %v2078_v2 = vor.u32 %v2550_v0, %v2075_v1  ;;  %v410_v1 = vperm.slane %v2981_v15, 1  ;;  %v2569_v15 = vld [vmem:[#allocation2 + $0x38] sm:$0xff] }
 0x13c   :  { %573 = vmatpush.bf16.msrb.mxu0 %v2034_v6  ;;  %600 = vmatpush.bf16.msrb.mxu2 %v2030_v26  ;;  %v2002_v6 = vor.u32 %v2533_v4, %v2001_v3 }
 0x13d   :  { %613 = vmatpush.bf16.msrb.mxu3 %v2094_v28  ;;  %v2059_v28 = vld [vmem:[%s3581_s5 + $0x88] sm:$0xf0] }
 0x140   :  { %574 = vmatpush.bf16.msrb.mxu0 %v2026_v23  ;;  %601 = vmatpush.bf16.msrb.mxu2 %v2022_v50  ;;  %v2530_v23 = vld [vmem:[%s3581_s5 + $0x4] sm:$0xf] }
 0x141   :  { %614 = vmatpush.bf16.msrb.mxu3 %v2086_v53  ;;  %v1998_v26 = vor.u32 %v2530_v23, %v1995_v24 }
 0x144   :  { %575 = vmatpush.bf16.msrb.mxu0 %v2018_v46  ;;  %602 = vmatpush.bf16.msrb.mxu2 %v2014_v62 }
 0x145   :  { %615 = vmatpush.bf16.msrb.mxu3 %v2078_v2 }
 0x148   :  { %576 = vmatpush.bf16.msrb.mxu0 %v2010_v57  ;;  %603 = vmatpush.bf16.msrb.mxu2 %v2006_v11 }
 0x149   :  { %616 = vmatpush.bf16.msrb.mxu3 %v2070_v17 }
 0x14c   :  { %577 = vmatpush.bf16.msrb.mxu0 %v2002_v6  ;;  %604 = vmatpush.bf16.msrb.mxu2 %v1998_v26 }
 0x150   :  { %578 = vmatpush.bf16.msrb.mxu0 %v1994_v21  ;;  %v710_v21 = vpack.c.bf16 %v123_v58, %v123_v58 }
 0x1ac   :  { %v221_v10 = vpop.xlane.xlu0 %220 }
 0x1ad   :  { %2674 = vrcp.f32 %v221_v10  ;;  %v233_v32 = vand.u32 2147483648, %v221_v10  ;;  %v231_v34 = vand.u32 2147483647, %v221_v10  ;;  %vm227_vm2 = vweird.f32 %v221_v10 }
 0x1af   :  { %v234_v36 = vor.u32 1.1754944e-38, %v233_v32  ;;  %vm232_vm4 = vcmp.eq.f32.partialorder %v231_v34, 8.507059e+37  ;;  %v624_v32 = vld [vmem:[%s3578_s2 + $0x8] sm:$0xff] }
 0x1b3   :  { %v2675_v29 = vpop.eup %2674 }
 0x1b4   :  { %v223_v30 = vmul.f32 %v2675_v29, %v221_v10  ;;  %vm228_vm1 = vweird.f32 %v2675_v29  ;;  %v2066_v10 = vor.u32 %v2549_v7, %v2065_v5 }
 0x1b5   :  { %vm229_vm3 = vmor %vm227_vm2, %vm228_vm1 }
 0x1b6   :  { %v224_v31 = vsub.f32 1.0, %v223_v30  ;;  %v116_v30 = vld [vmem:[%s3588_s12] sm:$0xff] }
 0x1b8   :  { %v225_v33 = vmul.f32 %v2675_v29, %v224_v31  ;;  %v623_v31 = vld [vmem:[%s3578_s2] sm:$0xff] }
 0x1b9   :  { %v628_v34 = vpack.c.bf16 %v623_v31, %v623_v31  ;;  %v2568_v31 = vld [vmem:[#allocation2 + $0x30] sm:$0xff] }
 0x1ba   :  { %v226_v35 = vadd.f32 %v2675_v29, %v225_v33  ;;  %v2842_v33 = vmov 16  }
 0x1bb   :  { %2669 = vset.pattern.permute.xlu1 %v2842_v33  ;;  %2670 = vset.pattern.permute.xlu2 %v2842_v33 }
 0x1bc   :  { %v230_v37 = vsel %vm229_vm3, %v2675_v29, %v226_v35  ;;  %v2062_v29 = vor.u32 %v2546_v25, %v2059_v28  ;;  %v629_v35 = vpack.c.bf16 %v624_v32, %v624_v32  ;;  %634 = vperm.xlu1 %2669, %v116_v30   ;;  %2671 = vset.pattern.permute.xlu0 %v2842_v33  ;;  %v2576_v32 = vld [vmem:[#allocation2 + $0x70] sm:$0xff] }
 0x1bd   :  { %v235_v38 = vsel %vm232_vm4, %v234_v36, %v230_v37  ;;  %v625_v36 = vld [vmem:[%s3578_s2 + $0x10] sm:$0xff]  ;;  %v626_v37 = vld [vmem:[%s3578_s2 + $0x18] sm:$0xff]  ;;  %1122 = vperm.xlu2 %2670, %v3371_v47  }
 0x1be   :  { %v236_v40 = vmul.f32 %v3072_v63, %v235_v38  ;;  %v2553_v63 = vld [vmem:[%s3581_s5 + $0xb4] sm:$0xf0]  ;;  %617 = vmatpush.bf16.msrb.mxu3 %v2062_v29  ;;  %v630_v38 = vpack.c.bf16 %v625_v36, %v625_v36 }
 0x1bf   :  { %v2082_v49 = vor.u32 %v2553_v63, %v2081_v45  ;;  %v3366_v63 = vld [vmem:[%s3588_s12 + $0x8] sm:$0xff] }
 0x1c0   :  { %v238_v41 = vmul.f32 %v237_v39, %v236_v40  ;;  %v631_v39 = vpack.c.bf16 %v626_v37, %v626_v37  ;;  %v643_v40 = vsel %vm641_vm5, %v628_v34, 0  ;;  %v1113_v48 = vpack.c.bf16 %v3371_v47, %v3366_v63  ;;  %v2585_v37 = vld [vmem:[#allocation2 + $0xb8] sm:$0xff]  ;;  %v115_v47 = vld [vmem:[#allocation8 + $0x10] sm:$0xff] }
 0x1c1   :  { %588 = vmatpush.bf16.msrb.mxu1 %v2082_v49  ;;  %661 = vmatpush.bf16.msra.mxu0 %v643_v40  ;;  %v2575_v40 = vld [vmem:[#allocation2 + $0x68] sm:$0xff] }
 0x1c2   :  { %v256_v42 = vpack.c.bf16 %v238_v41, %v238_v41  ;;  %239 = vst [vmem:[#allocation10] sm:$0x3] %v238_v41  ;;  %v646_v41 = vsel %vm641_vm5, %v629_v35, 0  ;;  %v652_v43 = vsel %vm641_vm5, %v631_v39, 0  ;;  %v2567_v39 = vld [vmem:[#allocation2 + $0x28] sm:$0xff] }
 0x1c4   :  { %345 = vmatmul.bf16.vlgmr.msra.gmra.mxu2 %v256_v42  ;;  %358 = vmatmul.bf16.vlgmr.msra.gmra.mxu3 %v256_v42  ;;  %v649_v42 = vsel %vm641_vm5, %v630_v38, 0  ;;  %v2593_v38 = vld [vmem:[#allocation2 + $0xf8] sm:$0xff] }
 0x1c5   :  { %589 = vmatpush.bf16.msrb.mxu1 %v2074_v61  ;;  %687 = vmatpush.bf16.msra.mxu2 %v649_v42 }
 0x1c6   :  { %700 = vmatpush.bf16.msra.mxu3 %v652_v43  ;;  %1117 = vperm.xlu1 %2669, %v3366_v63   ;;  %v2594_v63 = vld [vmem:[%s3583_s7] sm:$0xff] }
 0x1c9   :  { %590 = vmatpush.bf16.msrb.mxu1 %v2066_v10 }
 0x1cd   :  { %591 = vmatpush.bf16.msrb.mxu1 %v2058_v22 }
 0x1ce   :  { %1231 = vperm.xlu1 %2669, %v3382_v51  }
 0x1d1   :  { %674 = vmatpush.bf16.msra.mxu1 %v646_v41 }
 0x1d6   :  { %717 = vperm.xlu1 %2669, %v123_v58   ;;  %v2564_v58 = vld [vmem:[#allocation2 + $0x10] sm:$0xff] }
 0x22e   :  { %v635_v8 = vpop.permute.xlu1 %634 }
 0x247   :  { %v346_v44 = vpop.f32.mrf.mxu2  ;;  %v359_v45 = vpop.f32.mrf.mxu3 }
 0x248   :  { %v365_v46 = vrot.slane %v359_v45, 6  ;;  %v2584_v45 = vld [vmem:[#allocation2 + $0xb0] sm:$0xff] }
 0x24a   :  { %v366_v49 = vsel %vm130_vm0, %v346_v44, %v365_v46  ;;  %v2592_v46 = vld [vmem:[#allocation2 + $0xf0] sm:$0xff] }
 0x24b   :  { %v368_v50 = vmul.f32 %v366_v49, %v3007_v27  ;;  %v627_v27 = vpack.c.bf16 %v116_v30, %v116_v30  ;;  %v2566_v49 = vld [vmem:[#allocation2 + $0x20] sm:$0xff] }
 0x24d   :  { %402 = vst [vmem:[#allocation1] ss:$4 sm:$0xff] %v368_v50  ;;  %v2574_v50 = vld [vmem:[#allocation2 + $0x60] sm:$0xff] }
 0x24f   :  { %v348_v52 = vpop.f32.mrf.mxu2  ;;  %v361_v53 = vpop.f32.mrf.mxu3 }
 0x250   :  { %v2583_v52 = vld [vmem:[#allocation2 + $0xa8] sm:$0xff] }
 0x251   :  { %v2591_v53 = vld [vmem:[#allocation2 + $0xe8] sm:$0xff] }
 0x254   :  { %v403_v54 = vld.sshfl [vmem:[#allocation1] sm:$0xff pattern:$0x73625140]  ;;  %v404_v55 = vld.sshfl [vmem:[#allocation1 + $0x8] sm:$0xff pattern:$0x73625140] }
 0x255   :  { %v407_v56 = vpack.c.bf16 %v403_v54, %v403_v54  ;;  %v408_v57 = vpack.c.bf16 %v404_v55, %v404_v55  ;;  %v2565_v54 = vld [vmem:[#allocation2 + $0x18] sm:$0xff] }
 0x256   :  { %v2573_v55 = vld [vmem:[#allocation2 + $0x58] sm:$0xff] }
 0x257   :  { %579 = vmatmul.bf16.vlgmr.msrb.gmra.mxu0 %v407_v56  ;;  %592 = vmatmul.bf16.vlgmr.msrb.gmra.mxu1 %v408_v57 }
 0x258   :  { %605 = vmatmul.bf16.vlgmr.msrb.gmra.mxu2 %v407_v56  ;;  %618 = vmatmul.bf16.vlgmr.msrb.gmra.mxu3 %v408_v57  ;;  %v2582_v56 = vld [vmem:[#allocation2 + $0xa0] sm:$0xff] }
 0x259   :  { %v2590_v57 = vld [vmem:[#allocation2 + $0xe0] sm:$0xff] }
 0x267   :  { %2119 = vmatmul.msk.bf16.vlgmr.msra.gmra.mxu0 %vm637_vm6, %v627_v27  ;;  %2120 = vmatmul.msk.bf16.vlgmr.msra.gmra.mxu1 %vm637_vm6, %v627_v27 }
 0x268   :  { %2121 = vmatmul.msk.bf16.vlgmr.msra.gmra.mxu2 %vm637_vm6, %v627_v27  ;;  %2122 = vmatmul.msk.bf16.vlgmr.msra.gmra.mxu3 %vm637_vm6, %v627_v27  ;;  %v2572_v27 = vld [vmem:[#allocation2 + $0x50] sm:$0xff] }
 0x2d4   :  { %v580_v60 = vpop.f32.mrf.mxu0  ;;  %v593_v61 = vpop.f32.mrf.mxu1 }
 0x2d5   :  { %v581_v62 = vadd.f32 %v580_v60, %v409_v59  ;;  %v2581_v59 = vld [vmem:[#allocation2 + $0x98] sm:$0xff] }
 0x2d6   :  { %v2589_v60 = vld [vmem:[#allocation2 + $0xd8] sm:$0xff] }
 0x2d7   :  { %v3393_v0 = vadd.f32 %v593_v61, %v581_v62  ;;  %v2563_v61 = vld [vmem:[#allocation2 + $0x8] sm:$0xff] }
 0x2d8   :  { %v2571_v62 = vld [vmem:[#allocation2 + $0x48] sm:$0xff] }
 0x2db   :  { %v606_v2 = vpop.f32.mrf.mxu2  ;;  %v619_v3 = vpop.f32.mrf.mxu3 }
 0x2dc   :  { %v607_v4 = vadd.f32 %v606_v2, %v410_v1  ;;  %v582_v5 = vpop.f32.mrf.mxu0  ;;  %v595_v6 = vpop.f32.mrf.mxu1  ;;  %v2580_v1 = vld [vmem:[#allocation2 + $0x90] sm:$0xff] }
 0x2dd   :  { %v2588_v2 = vld [vmem:[#allocation2 + $0xd0] sm:$0xff]  ;;  %v2579_v5 = vld [vmem:[#allocation2 + $0x88] sm:$0xff] }
 0x2de   :  { %v3396_v7 = vadd.f32 %v619_v3, %v607_v4  ;;  %v2562_v3 = vld [vmem:[#allocation2] sm:$0xff]  ;;  %v2587_v6 = vld [vmem:[#allocation2 + $0xc8] sm:$0xff] }
 0x2df   :  { %v2570_v4 = vld [vmem:[#allocation2 + $0x40] sm:$0xff] }
 0x2e3   :  { %v608_v9 = vpop.f32.mrf.mxu2  ;;  %v621_v10 = vpop.f32.mrf.mxu3 }
 0x2e4   :  { %v663_v11 = vpop.f32.mrf.mxu0  ;;  %v676_v12 = vpop.f32.mrf.mxu1  ;;  %v2586_v9 = vld [vmem:[#allocation2 + $0xc0] sm:$0xff] }
 0x2e5   :  { %v664_v14 = vadd.f32 %v663_v11, %v635_v8  ;;  %v677_v13 = vadd.f32 %v676_v12, %v635_v8  ;;  %v3422_v10 = vpop.permute.xlu1 %1117 }
 0x2e7   :  { %v706_v16 = vmax.f32 %v664_v14, 0.0  ;;  %v707_v17 = vmax.f32 %v677_v13, 0.0 }
 0x2e9   :  { %v3398_v18 = vpack.c.bf16 %v706_v16, %v706_v16  ;;  %v3400_v19 = vpack.c.bf16 %v707_v17, %v707_v17 }
 0x2eb   :  { %v689_v22 = vpop.f32.mrf.mxu2  ;;  %v702_v23 = vpop.f32.mrf.mxu3  ;;  %v724_v24 = vsel %vm641_vm5, %v3398_v18, 0  ;;  %v727_v25 = vsel %vm641_vm5, %v3400_v19, 0 }
 0x2ec   :  { %v690_v26 = vadd.f32 %v689_v22, %v635_v8  ;;  %v703_v28 = vadd.f32 %v702_v23, %v635_v8  ;;  %742 = vmatpush.bf16.msrb.mxu0 %v724_v24  ;;  %755 = vmatpush.bf16.msrb.mxu1 %v727_v25  ;;  %v665_v29 = vpop.f32.mrf.mxu0  ;;  %v678_v30 = vpop.f32.mrf.mxu1  ;;  %v2578_v8 = vld [vmem:[#allocation2 + $0x80] sm:$0xff] }
 0x2ed   :  { %v3424_v11 = vpop.permute.xlu1 %1231 }
 0x2ee   :  { %v708_v33 = vmax.f32 %v690_v26, 0.0  ;;  %v709_v34 = vmax.f32 %v703_v28, 0.0 }
 0x2ef   :  { %2123 = vmatmul.msk.bf16.vlgmr.msrb.gmra.mxu0 %vm637_vm6, %v710_v21  ;;  %2124 = vmatmul.msk.bf16.vlgmr.msrb.gmra.mxu1 %vm637_vm6, %v710_v21 }
 0x2f0   :  { %1061 = vmatpush.bf16.msra.mxu0 %v2569_v15  ;;  %1074 = vmatpush.bf16.msra.mxu1 %v2577_v20  ;;  %v3408_v35 = vpack.c.bf16 %v708_v33, %v708_v33  ;;  %v3410_v36 = vpack.c.bf16 %v709_v34, %v709_v34  ;;  %v3433_v33 = vld [vmem:[%s3588_s12 + $0x28] sm:$0xff]  ;;  %v3438_v34 = vld [vmem:[%s3588_s12 + $0x30] sm:$0xff] }
 0x2f1   :  { %1241 = vperm.xlu2 %2670, %v3433_v33   ;;  %1246 = vperm.xlu0 %2671, %v3438_v34  }
 0x2f2   :  { %v730_v41 = vsel %vm641_vm5, %v3408_v35, 0  ;;  %v733_v42 = vsel %vm641_vm5, %v3410_v36, 0 }
 0x2f3   :  { %v691_v43 = vpop.f32.mrf.mxu2  ;;  %v704_v44 = vpop.f32.mrf.mxu3  ;;  %768 = vmatpush.bf16.msrb.mxu2 %v730_v41  ;;  %781 = vmatpush.bf16.msrb.mxu3 %v733_v42  ;;  %v2598_v42 = vld [vmem:[%s3583_s7 + $0x20] sm:$0xff] }
 0x2f4   :  { %1062 = vmatpush.bf16.msra.mxu0 %v2568_v31  ;;  %1075 = vmatpush.bf16.msra.mxu1 %v2576_v32 }
 0x2f5   :  { %v718_v17 = vpop.permute.xlu1 %717 }
 0x2f6   :  { %2125 = vmatmul.msk.bf16.vlgmr.msrb.gmra.mxu2 %vm637_vm6, %v710_v21  ;;  %2126 = vmatmul.msk.bf16.vlgmr.msrb.gmra.mxu3 %vm637_vm6, %v710_v21  ;;  %v800_v21 = vlaneseq }
 0x2f7   :  { %1087 = vmatpush.bf16.msra.mxu2 %v2585_v37  ;;  %1100 = vmatpush.bf16.msra.mxu3 %v2593_v38  ;;  %v2600_v37 = vld [vmem:[%s3583_s7 + $0x30] sm:$0xff]  ;;  %v3453_v38 = vld [vmem:[%s3588_s12 + $0x20] sm:$0xff] }
 0x2f8   :  { %1063 = vmatpush.bf16.msra.mxu0 %v2567_v39  ;;  %1076 = vmatpush.bf16.msra.mxu1 %v2575_v40  ;;  %vm802_vm9 = vcmp.lt.s32.totalorder %v800_v21, 512  ;;  %v2599_v39 = vld [vmem:[%s3583_s7 + $0x28] sm:$0xff] }
 0x2f9   :  { %1236 = vperm.xlu2 %2670, %v3453_v38  }
 0x2fb   :  { %1088 = vmatpush.bf16.msra.mxu2 %v2584_v45  ;;  %1101 = vmatpush.bf16.msra.mxu3 %v2592_v46 }
 0x2fc   :  { %1064 = vmatpush.bf16.msra.mxu0 %v2566_v49  ;;  %1077 = vmatpush.bf16.msra.mxu1 %v2574_v50 }
 0x2ff   :  { %1089 = vmatpush.bf16.msra.mxu2 %v2583_v52  ;;  %1102 = vmatpush.bf16.msra.mxu3 %v2591_v53 }
 0x300   :  { %1065 = vmatpush.bf16.msra.mxu0 %v2565_v54  ;;  %1078 = vmatpush.bf16.msra.mxu1 %v2573_v55 }
 0x303   :  { %1090 = vmatpush.bf16.msra.mxu2 %v2582_v56  ;;  %1103 = vmatpush.bf16.msra.mxu3 %v2590_v57  ;;  %v2597_v57 = vld [vmem:[%s3583_s7 + $0x18] sm:$0xff] }
 0x304   :  { %1066 = vmatpush.bf16.msra.mxu0 %v2564_v58  ;;  %1079 = vmatpush.bf16.msra.mxu1 %v2572_v27  ;;  %v2596_v58 = vld [vmem:[%s3583_s7 + $0x10] sm:$0xff]  ;;  %v2595_v27 = vld [vmem:[%s3583_s7 + $0x8] sm:$0xff] }
 0x307   :  { %1091 = vmatpush.bf16.msra.mxu2 %v2581_v59  ;;  %1104 = vmatpush.bf16.msra.mxu3 %v2589_v60 }
 0x308   :  { %1067 = vmatpush.bf16.msra.mxu0 %v2563_v61  ;;  %1080 = vmatpush.bf16.msra.mxu1 %v2571_v62  ;;  %v1123_v61 = vpop.permute.xlu2 %1122 }
 0x30b   :  { %1092 = vmatpush.bf16.msra.mxu2 %v2580_v1  ;;  %1105 = vmatpush.bf16.msra.mxu3 %v2588_v2 }
 0x30c   :  { %1068 = vmatpush.bf16.msra.mxu0 %v2562_v3  ;;  %1081 = vmatpush.bf16.msra.mxu1 %v2570_v4 }
 0x30f   :  { %1093 = vmatpush.bf16.msra.mxu2 %v2579_v5  ;;  %1106 = vmatpush.bf16.msra.mxu3 %v2587_v6  ;;  %v3486_v5 = vld [vmem:[%s3584_s8] sm:$0xff] }
 0x310   :  { %1069 = vmatmul.bf16.vlgmr.msra.gmra.mxu0 %v3398_v18  ;;  %1082 = vmatmul.bf16.vlgmr.msra.gmra.mxu1 %v3400_v19 }
 0x313   :  { %1094 = vmatpush.bf16.msra.mxu2 %v2578_v8  ;;  %1107 = vmatpush.bf16.msra.mxu3 %v2586_v9  ;;  %v1381_v9 = vunpack.c.l.b16 %v3486_v5 }
 0x316   :  { %1095 = vmatmul.bf16.vlgmr.msra.gmra.mxu2 %v3408_v35  ;;  %1108 = vmatmul.bf16.vlgmr.msra.gmra.mxu3 %v3410_v36  ;;  %v1227_v35 = vpack.c.bf16 %v3438_v34, %v3433_v33  ;;  %v2601_v36 = vld [vmem:[%s3583_s7 + $0x38] sm:$0xff]  ;;  %v3508_v33 = vpack.c.bf16 %v3393_v0, %v3393_v0  ;;  %v1382_v0 = vunpack.c.h.b16 %v3486_v5  ;;  %v2436_v5 = vld [vmem:[#allocation5 + $0xe0] sm:$0xf]  ;;  %s2844_s7 = smov [#allocation11]  }
 0x317   :  { %1212 = vmatpush.bf16.msrb.mxu1 %v2601_v36  ;;  %s1906_s20 = sshll.u32 %s2844_s7, 4  ;;  %s1907_s20 = int_to_ptr.vmem [resolvable:$true] %s1906_s20 }
 0x31b   :  { %1213 = vmatpush.bf16.msrb.mxu1 %v2600_v37  ;;  %v2340_v37 = vld [vmem:[#allocation5 + $0x20] sm:$0xf] }
 0x31f   :  { %1214 = vmatpush.bf16.msrb.mxu1 %v2599_v39 }
 0x323   :  { %1215 = vmatpush.bf16.msrb.mxu1 %v2598_v42 }
 0x327   :  { %1216 = vmatpush.bf16.msrb.mxu1 %v2597_v57 }
 0x32b   :  { %1217 = vmatpush.bf16.msrb.mxu1 %v2596_v58 }
 0x32f   :  { %1218 = vmatpush.bf16.msrb.mxu1 %v2595_v27 }
 0x333   :  { %1219 = vmatpush.bf16.msrb.mxu1 %v2594_v63 }
 0x36c   :  { %v744_v12 = vpop.f32.mrf.mxu0  ;;  %v757_v14 = vpop.f32.mrf.mxu1 }
 0x36d   :  { %v758_v15 = vadd.f32 %v757_v14, %v718_v17  ;;  %v745_v24 = vadd.f32 %v744_v12, %v718_v17  ;;  %v1383_v12 = vpack.c.b16 %v1381_v9, %v1381_v9 }
 0x36f   :  { %v791_v19 = vrot.slane %v758_v15, 7  ;;  %v1389_v15 = vsel %vm641_vm5, %v1383_v12, 0  ;;  %v2637_v12 = vld [vmem:[#allocation5 + $0xe4] sm:$0xf0] }
 0x371   :  { %v795_v28 = vsel %vm794_vm7, %v745_v24, %v791_v19  ;;  %v2372_v19 = vld [vmem:[#allocation5 + $0x60] sm:$0xf] }
 0x374   :  { %v746_v13 = vpop.f32.mrf.mxu0  ;;  %v759_v16 = vpop.f32.mrf.mxu1 }
 0x375   :  { %v2623_v16 = vld [vmem:[#allocation5 + $0x74] sm:$0xf0] }
 0x379   :  { %v770_v20 = vpop.f32.mrf.mxu2  ;;  %v783_v18 = vpop.f32.mrf.mxu3 }
 0x37a   :  { %v771_v22 = vadd.f32 %v770_v20, %v718_v17  ;;  %v784_v23 = vadd.f32 %v783_v18, %v718_v17  ;;  %v1226_v20 = vpack.c.bf16 %v3453_v38, %v3382_v51  ;;  %v2356_v51 = vld [vmem:[#allocation5 + $0x40] sm:$0xf]  ;;  %v2613_v38 = vld [vmem:[#allocation5 + $0x24] sm:$0xf0] }
 0x37b   :  { %v2341_v39 = vor.u32 %v2613_v38, %v2340_v37  ;;  %v2622_v37 = vld [vmem:[#allocation5 + $0x74] sm:$0xf]  ;;  %v2382_v38 = vld [vmem:[#allocation5 + $0x78] sm:$0xf0] }
 0x37c   :  { %v792_v25 = vrot.slane %v771_v22, 6  ;;  %v793_v26 = vrot.slane %v784_v23, 5  ;;  %v2621_v22 = vld [vmem:[#allocation5 + $0x64] sm:$0xf0] }
 0x37d   :  { %v2373_v24 = vor.u32 %v2621_v22, %v2372_v19  ;;  %v2314_v19 = vld [vmem:[%s3584_s8 + $0x28] sm:$0xf]  ;;  %v2607_v22 = vld [vmem:[%s3584_s8 + $0x2c] sm:$0xf0] }
 0x37e   :  { %v797_v29 = vsel %vm796_vm8, %v792_v25, %v793_v26  ;;  %v2364_v25 = vld [vmem:[#allocation5 + $0x50] sm:$0xf]  ;;  %v2619_v26 = vld [vmem:[#allocation5 + $0x54] sm:$0xf0] }
 0x37f   :  { %v798_v30 = vsel %vm130_vm0, %v795_v28, %v797_v29  ;;  %v2365_v28 = vor.u32 %v2619_v26, %v2364_v25  ;;  %v2617_v29 = vld [vmem:[#allocation5 + $0x44] sm:$0xf0]  ;;  %v2606_v25 = vld [vmem:[%s3584_s8 + $0x2c] sm:$0xf]  ;;  %v2316_v26 = vld [vmem:[%s3584_s8 + $0x30] sm:$0xf0] }
 0x380   :  { %804 = vst.msk [vmem:[%s3590_s14] sm:$0xf] %vm802_vm9, %v798_v30  ;;  %v2357_v30 = vor.u32 %v2617_v29, %v2356_v51  ;;  %v2306_v51 = vld [vmem:[%s3584_s8 + $0x18] sm:$0xf]  ;;  %v2319_v29 = vor.u32 %v2606_v25, %v2316_v26  ;;  %v2342_v25 = vld [vmem:[#allocation5 + $0x28] sm:$0xf0] }
 0x381   :  { %v772_v31 = vpop.f32.mrf.mxu2  ;;  %v785_v32 = vpop.f32.mrf.mxu3 }
 0x382   :  { %v2348_v31 = vld [vmem:[#allocation5 + $0x30] sm:$0xf]  ;;  %v2615_v32 = vld [vmem:[#allocation5 + $0x34] sm:$0xf0] }
 0x383   :  { %v2349_v36 = vor.u32 %v2615_v32, %v2348_v31  ;;  %v2604_v31 = vld [vmem:[%s3584_s8 + $0x1c] sm:$0xf]  ;;  %v2308_v32 = vld [vmem:[%s3584_s8 + $0x20] sm:$0xf0] }
 0x38d   :  { %v1070_v40 = vpop.f32.mrf.mxu0  ;;  %v1083_v41 = vpop.f32.mrf.mxu1 }
 0x38e   :  { %v1084_v45 = vadd.f32 %v1083_v41, %v1070_v40  ;;  %v2332_v40 = vld [vmem:[#allocation5 + $0x10] sm:$0xf]  ;;  %v2611_v41 = vld [vmem:[#allocation5 + $0x14] sm:$0xf0] }
 0x38f   :  { %v2333_v42 = vor.u32 %v2611_v41, %v2332_v40  ;;  %v2311_v41 = vor.u32 %v2604_v31, %v2308_v32  ;;  %v2626_v31 = vld [vmem:[#allocation5 + $0x94] sm:$0xf] }
 0x395   :  { %v1072_v43 = vpop.f32.mrf.mxu0  ;;  %v1085_v44 = vpop.f32.mrf.mxu1 }
 0x396   :  { %v2324_v43 = vld [vmem:[#allocation5] sm:$0xf]  ;;  %v2609_v44 = vld [vmem:[#allocation5 + $0x4] sm:$0xf0] }
 0x399   :  { %v1096_v46 = vpop.f32.mrf.mxu2  ;;  %v1109_v49 = vpop.f32.mrf.mxu3 }
 0x39a   :  { %v1097_v50 = vadd.f32 %v1096_v46, %v1084_v45  ;;  %v2325_v45 = vor.u32 %v2609_v44, %v2324_v43  ;;  %v2420_v43 = vld [vmem:[#allocation5 + $0xc0] sm:$0xf]  ;;  %v2633_v44 = vld [vmem:[#allocation5 + $0xc4] sm:$0xf0] }
 0x39c   :  { %v1110_v52 = vadd.f32 %v1109_v49, %v1097_v50  ;;  %v1242_v49 = vpop.permute.xlu2 %1241 }
 0x39e   :  { %v1114_v53 = vpack.c.bf16 %v1110_v52, %v1110_v52  ;;  %v1247_v52 = vpop.permute.xlu0 %1246 }
 0x3a0   :  { %v1129_v54 = vsel %vm641_vm5, %v1114_v53, 0  ;;  %1287 = vmatpush.bf16.xpose.msrb.mxu3 %v1114_v53 }
 0x3a1   :  { %v1098_v55 = vpop.f32.mrf.mxu2  ;;  %v1111_v56 = vpop.f32.mrf.mxu3  ;;  %1138 = vmatpush.bf16.msrb.mxu0 %v1129_v54 }
 0x3a4   :  { %2255 = vmatmul.msk.bf16.vlgmr.msrb.gmra.mxu0 %vm637_vm6, %v1113_v48  ;;  %v3479_v48 = vpack.c.bf16 %v115_v47, %v115_v47  ;;  %v1237_v56 = vpop.permute.xlu2 %1236 }
 0x3a6   :  { %v1294_v23 = vrot.slane %v3479_v48, 1 }
 0x3a7   :  { %1288 = vmatmul.bf16.vlgmr.msrb.gmra.mxu3 %v3479_v48  ;;  %v2437_v48 = vor.u32 %v2637_v12, %v2436_v5  ;;  %v2625_v5 = vld [vmem:[#allocation5 + $0x84] sm:$0xf0] }
 0x421   :  { %v1140_v59 = vpop.f32.mrf.mxu0 }
 0x422   :  { %v1141_v60 = vadd.f32 %v1140_v59, %v3422_v10  ;;  %v2380_v10 = vld [vmem:[#allocation5 + $0x70] sm:$0xf] }
 0x423   :  { %v2381_v21 = vor.u32 %v2623_v16, %v2380_v10  ;;  %v2294_v10 = vld [vmem:[%s3584_s8 + $0x8] sm:$0xf]  ;;  %v2603_v16 = vld [vmem:[%s3584_s8 + $0xc] sm:$0xf0] }
 0x424   :  { %v1145_v2 = vmax.f32 %v1141_v60, 0.0 }
 0x429   :  { %v1142_v62 = vpop.f32.mrf.mxu0 }
 0x42a   :  { %v1143_v1 = vadd.f32 %v1142_v62, %v1123_v61  ;;  %v1289_v6 = vpop.f32.mrf.mxu3 }
 0x42b   :  { %v3502_v46 = vpack.c.bf16 %v1289_v6, %v1289_v6 }
 0x42c   :  { %v1146_v3 = vmax.f32 %v1143_v1, 0.0  ;;  %v1384_v1 = vpack.c.b16 %v1382_v0, %v1382_v0  ;;  %v2634_v0 = vld [vmem:[#allocation5 + $0xd4] sm:$0xf] }
 0x42e   :  { %v1163_v4 = vpack.c.bf16 %v1146_v3, %v1145_v2  ;;  %v1392_v3 = vsel %vm641_vm5, %v1384_v1, 0  ;;  %v2629_v1 = vld [vmem:[#allocation5 + $0xa4] sm:$0xf0] }
 0x430   :  { %1220 = vmatmul.bf16.vlgmr.msrb.gmra.mxu1 %v1163_v4 }
 0x432   :  { %v1291_v14 = vpop.f32.mrf.mxu3 }
 0x433   :  { %v2428_v14 = vld [vmem:[#allocation5 + $0xd0] sm:$0xf] }
 0x4ad   :  { %v1221_v8 = vpop.f32.mrf.mxu1 }
 0x4b5   :  { %v1223_v13 = vpop.f32.mrf.mxu1 }
 0x4b6   :  { %v1228_v17 = vpack.c.bf16 %v1223_v13, %v1221_v8  ;;  %v2639_v8 = vld [vmem:[#allocation5 + $0xf4] sm:$0xf0] }
 0x4b7   :  { %v2635_v13 = vld [vmem:[#allocation5 + $0xd4] sm:$0xf0] }
 0x4b8   :  { %v1300_v18 = vsel %vm1295_vm10, %v1228_v17, 0  ;;  %1263 = vmatpush.bf16.msrb.mxu2 %v1228_v17  ;;  %v2602_v17 = vld [vmem:[%s3584_s8 + $0xc] sm:$0xf]  ;;  %v2429_v40 = vor.u32 %v2635_v13, %v2428_v14  ;;  %v1509_v14 = vpack.c.bf16 %v3396_v7, %v3396_v7 }
 0x4b9   :  { %1309 = vmatpush.bf16.xpose.msra.mxu0 %v1300_v18  ;;  %v2295_v18 = vor.u32 %v2603_v16, %v2294_v10  ;;  %v2616_v13 = vld [vmem:[#allocation5 + $0x44] sm:$0xf]  ;;  %v2358_v10 = vld [vmem:[#allocation5 + $0x48] sm:$0xf0] }
 0x4ba   :  { %v2361_v16 = vor.u32 %v2616_v13, %v2358_v10  ;;  %v2628_v7 = vld [vmem:[#allocation5 + $0xa4] sm:$0xf] }
 0x4bb   :  { %2288 = vmatmul.msk.bf16.vlgmr.msrb.gmra.mxu2 %vm1249_vm11, %v1226_v20  ;;  %v2676_v10 = vld [vmem:[#allocation8] sm:$0xff] }
 0x4bc   :  { %1401 = vmatpush.bf16.msra.mxu2 %v1389_v15 }
 0x4c0   :  { %1670 = vmatpush.bf16.msrb.mxu2 %v2381_v21  ;;  %2290 = vmatmul.msk.bf16.vlgmr.msra.gmra.mxu0 %vm1295_vm10, %v1294_v23  ;;  %v2296_v21 = vld [vmem:[%s3584_s8 + $0x10] sm:$0xf0] }
 0x4c1   :  { %1361 = vmatpush.bf16.msrb.mxu0 %v2295_v18  ;;  %v2350_v18 = vld [vmem:[#allocation5 + $0x38] sm:$0xf0] }
 0x4c4   :  { %1671 = vmatpush.bf16.msrb.mxu2 %v2373_v24  ;;  %v2315_v24 = vor.u32 %v2607_v22, %v2314_v19  ;;  %v2414_v22 = vld [vmem:[#allocation5 + $0xb8] sm:$0xf0] }
 0x4c6   :  { %1454 = vmatpush.bf16.msra.mxu0 %v2315_v24  ;;  %v2612_v24 = vld [vmem:[#allocation5 + $0x24] sm:$0xf] }
 0x4c7   :  { %v2345_v26 = vor.u32 %v2612_v24, %v2342_v25  ;;  %v2677_v25 = vld [vmem:[#allocation8 + $0x8] sm:$0xff] }
 0x4c8   :  { %1672 = vmatpush.bf16.msrb.mxu2 %v2365_v28 }
 0x4cb   :  { %2289 = vmatmul.msk.bf16.gmra.mxu2 %vm1249_vm11, %v1227_v35 }
 0x4cc   :  { %1673 = vmatpush.bf16.msrb.mxu2 %v2357_v30  ;;  %v2605_v30 = vld [vmem:[%s3584_s8 + $0x1c] sm:$0xf0]  ;;  %s2843_s8 = smov [#allocation10]  }
 0x4cd   :  { %s1893_s1 = sshll.u32 %s2843_s8, 4  ;;  %s1894_s1 = int_to_ptr.vmem [resolvable:$true] %s1893_s1 }
 0x4ce   :  { %1898 = dma.vmem_to_hbm [thread:$0]  %s1894_s1, 32, %s1896_s24, [#allocation4]  }
 0x4d0   :  { %1674 = vmatpush.bf16.msrb.mxu2 %v2349_v36  ;;  %v2307_v36 = vor.u32 %v2605_v30, %v2306_v51  ;;  %v2334_v30 = vld [vmem:[#allocation5 + $0x18] sm:$0xf0] }
 0x4d2   :  { %1455 = vmatpush.bf16.msra.mxu0 %v2307_v36  ;;  %v2398_v36 = vld [vmem:[#allocation5 + $0x98] sm:$0xf0] }
 0x4d4   :  { %1675 = vmatpush.bf16.msrb.mxu2 %v2341_v39  ;;  %v2638_v39 = vld [vmem:[#allocation5 + $0xf4] sm:$0xf] }
 0x4d8   :  { %1676 = vmatpush.bf16.msrb.mxu2 %v2333_v42  ;;  %v2446_v42 = vld [vmem:[#allocation5 + $0xf8] sm:$0xf0] }
 0x4db   :  { %2302 = vmatmul.msk.bf16.vlgmr.msra.gmra.mxu2 %vm637_vm6, %v3502_v46 }
 0x4dc   :  { %1677 = vmatpush.bf16.msrb.mxu2 %v2325_v45  ;;  %v2385_v45 = vor.u32 %v2622_v37, %v2382_v38  ;;  %v2401_v37 = vor.u32 %v2626_v31, %v2398_v36  ;;  %v2608_v38 = vld [vmem:[#allocation5 + $0x4] sm:$0xf] }
 0x4eb   :  { %1678 = vmatmul.bf16.vlgmr.msrb.gmra.mxu2 %v3508_v33 }
 0x53d   :  { %v1311_v15 = vpop.f32.mrf.mxu0 }
 0x53e   :  { %v1265_v34 = vpop.f32.mrf.mxu2  ;;  %v1340_v28 = vpack.c.bf16 %v1311_v15, %v1311_v15 }
 0x53f   :  { %v1266_v63 = vadd.f32 %v1265_v34, %v3424_v11  ;;  %v2444_v11 = vld [vmem:[#allocation5 + $0xf0] sm:$0xf]  ;;  %v2449_v34 = vor.u32 %v2638_v39, %v2446_v42  ;;  %v2326_v39 = vld [vmem:[#allocation5 + $0x8] sm:$0xf0] }
 0x540   :  { %v2445_v9 = vor.u32 %v2639_v8, %v2444_v11  ;;  %2300 = vmatmul.msk.bf16.vlgmr.msrb.gmra.mxu0 %vm1249_vm11, %v1340_v28  ;;  %v2627_v11 = vld [vmem:[#allocation5 + $0x94] sm:$0xf0]  ;;  %v2390_v42 = vld [vmem:[#allocation5 + $0x88] sm:$0xf0] }
 0x541   :  { %v1275_v62 = vmax.f32 %v1266_v63, 0.0  ;;  %1696 = vmatpush.bf16.msrb.mxu0 %v2385_v45  ;;  %v2618_v63 = vld [vmem:[#allocation5 + $0x54] sm:$0xf] }
 0x546   :  { %v1267_v35 = vpop.f32.mrf.mxu2 }
 0x547   :  { %v1268_v57 = vadd.f32 %v1267_v35, %v1237_v56  ;;  %v2620_v35 = vld [vmem:[#allocation5 + $0x64] sm:$0xf]  ;;  %v2412_v56 = vld [vmem:[#allocation5 + $0xb0] sm:$0xf] }
 0x549   :  { %v1276_v59 = vmax.f32 %v1268_v57, 0.0  ;;  %v2631_v57 = vld [vmem:[#allocation5 + $0xb4] sm:$0xf0] }
 0x54b   :  { %v1315_v2 = vpack.c.bf16 %v1276_v59, %v1275_v62  ;;  %v2430_v59 = vld [vmem:[#allocation5 + $0xd8] sm:$0xf0]  ;;  %v2404_v62 = vld [vmem:[#allocation5 + $0xa0] sm:$0xf] }
 0x54d   :  { %v1318_v4 = vsel %vm1295_vm10, %v1315_v2, 0 }
 0x54e   :  { %v1270_v50 = vpop.f32.mrf.mxu2 }
 0x54f   :  { %v1271_v53 = vadd.f32 %v1270_v50, %v1242_v49  ;;  %v2374_v49 = vld [vmem:[#allocation5 + $0x68] sm:$0xf0]  ;;  %v2636_v50 = vld [vmem:[#allocation5 + $0xe4] sm:$0xf] }
 0x551   :  { %v1277_v58 = vmax.f32 %v1271_v53, 0.0  ;;  %v1313_v53 = vpop.f32.mrf.mxu0 }
 0x552   :  { %v2646_v53 = vld [vmem:[#allocation7 + $0x30] sm:$0xff] }
 0x556   :  { %v1272_v54 = vpop.f32.mrf.mxu2 }
 0x557   :  { %v1273_v55 = vadd.f32 %v1272_v54, %v1247_v52  ;;  %v2438_v52 = vld [vmem:[#allocation5 + $0xe8] sm:$0xf0] }
 0x559   :  { %v1278_v27 = vmax.f32 %v1273_v55, 0.0  ;;  %v2421_v55 = vor.u32 %v2633_v44, %v2420_v43 }
 0x55b   :  { %v1316_v47 = vpack.c.bf16 %v1278_v27, %v1277_v58  ;;  %v2377_v58 = vor.u32 %v2620_v35, %v2374_v49  ;;  %v2441_v27 = vor.u32 %v2636_v50, %v2438_v52  ;;  %v2647_v35 = vld [vmem:[#allocation7 + $0x38] sm:$0xff] }
 0x55c   :  { %v2655_v52 = vld [vmem:[#allocation7 + $0x78] sm:$0xff]  ;;  %1861 = vmatpush.bf16.msra.mxu2 %v2647_v35 }
 0x55d   :  { %v1321_v60 = vsel %vm1295_vm10, %v1316_v47, 0  ;;  %v2366_v47 = vld [vmem:[#allocation5 + $0x58] sm:$0xf0]  ;;  %1697 = vmatpush.bf16.msrb.mxu0 %v2377_v58 }
 0x55e   :  { %1329 = vmatpush.bf16.xpose.msra.mxu3 %v1321_v60  ;;  %v3514_v61 = vpop.f32.mrf.mxu2  ;;  %v2413_v60 = vor.u32 %v2631_v57, %v2412_v56  ;;  %v2369_v2 = vor.u32 %v2618_v63, %v2366_v47  ;;  %v2643_v63 = vld [vmem:[#allocation7 + $0x18] sm:$0xff] }
 0x560   :  { %1862 = vmatpush.bf16.msra.mxu2 %v2646_v53 }
 0x561   :  { %1698 = vmatpush.bf16.msrb.mxu0 %v2369_v2  ;;  %v2653_v2 = vld [vmem:[#allocation7 + $0x68] sm:$0xff] }
 0x565   :  { %1699 = vmatpush.bf16.msrb.mxu0 %v2361_v16 }
 0x566   :  { %1330 = vmatpush.bf16.xpose.msra.mxu3 %v1318_v4  ;;  %v1405_v6 = vpop.f32.mrf.mxu2  ;;  %v2405_v4 = vor.u32 %v2629_v1, %v2404_v62  ;;  %v2654_v62 = vld [vmem:[#allocation7 + $0x70] sm:$0xff]  ;;  %v2641_v1 = vld [vmem:[#allocation7 + $0x8] sm:$0xff] }
 0x567   :  { %v2396_v6 = vld [vmem:[#allocation5 + $0x90] sm:$0xf] }
 0x568   :  { %v2397_v8 = vor.u32 %v2627_v11, %v2396_v6  ;;  %v2650_v6 = vld [vmem:[#allocation7 + $0x50] sm:$0xff]  ;;  %v2649_v11 = vld [vmem:[#allocation7 + $0x48] sm:$0xff] }
 0x56d   :  { %2291 = vmatmul.msk.bf16.vlgmr.msra.gmra.mxu3 %vm1295_vm10, %v1294_v23  ;;  %v2299_v23 = vor.u32 %v2602_v17, %v2296_v21  ;;  %v2422_v17 = vld [vmem:[#allocation5 + $0xc8] sm:$0xf0]  ;;  %v2630_v21 = vld [vmem:[#allocation5 + $0xb4] sm:$0xf] }
 0x56e   :  { %1414 = vmatpush.bf16.msrb.mxu3 %v1392_v3  ;;  %v3530_v20 = vpop.f32.mrf.mxu2  ;;  %v2433_v3 = vor.u32 %v2634_v0, %v2430_v59 }
 0x56f   :  { %1374 = vmatpush.bf16.msra.mxu1 %v2299_v23  ;;  %v2417_v23 = vor.u32 %v2630_v21, %v2414_v22 }
 0x572   :  { %1683 = vmatpush.bf16.msra.mxu3 %v2445_v9  ;;  %2301 = vmatmul.msk.bf16.vlgmr.msra.gmra.mxu1 %vm1249_vm11, %v1340_v28  ;;  %v2388_v9 = vld [vmem:[#allocation5 + $0x80] sm:$0xf]  ;;  %v2406_v28 = vld [vmem:[#allocation5 + $0xa8] sm:$0xf0] }
 0x573   :  { %1467 = vmatpush.bf16.msrb.mxu1 %v2319_v29  ;;  %v2389_v12 = vor.u32 %v2625_v5, %v2388_v9  ;;  %v2409_v51 = vor.u32 %v2628_v7, %v2406_v28  ;;  %v2610_v29 = vld [vmem:[#allocation5 + $0x14] sm:$0xf] }
 0x574   :  { %v2337_v32 = vor.u32 %v2610_v29, %v2334_v30 }
 0x576   :  { %1684 = vmatpush.bf16.msra.mxu3 %v2437_v48  ;;  %v1681_v54 = vpop.f32.mrf.mxu2  ;;  %v2614_v48 = vld [vmem:[#allocation5 + $0x34] sm:$0xf] }
 0x577   :  { %1468 = vmatpush.bf16.msrb.mxu1 %v2311_v41  ;;  %v2353_v19 = vor.u32 %v2614_v48, %v2350_v18  ;;  %v2329_v41 = vor.u32 %v2608_v38, %v2326_v39  ;;  %v2645_v54 = vld [vmem:[#allocation7 + $0x28] sm:$0xff] }
 0x578   :  { %1863 = vmatpush.bf16.msra.mxu2 %v2645_v54 }
 0x579   :  { %1700 = vmatpush.bf16.msrb.mxu0 %v2353_v19 }
 0x57a   :  { %1685 = vmatpush.bf16.msra.mxu3 %v2429_v40  ;;  %v2624_v40 = vld [vmem:[#allocation5 + $0x84] sm:$0xf] }
 0x57b   :  { %1709 = vmatpush.bf16.msra.mxu1 %v2449_v34  ;;  %v2393_v43 = vor.u32 %v2624_v40, %v2390_v42 }
 0x57d   :  { %2303 = vmatmul.msk.bf16.vlgmr.msrb.gmra.mxu3 %vm637_vm6, %v3502_v46  ;;  %v2632_v46 = vld [vmem:[#allocation5 + $0xc4] sm:$0xf]  ;;  %1701 = vmatpush.bf16.msrb.mxu0 %v2345_v26 }
 0x57e   :  { %1686 = vmatpush.bf16.msra.mxu3 %v2421_v55  ;;  %v2425_v15 = vor.u32 %v2632_v46, %v2422_v17  ;;  %v1724_v46 = vperm.slane %v2676_v10, 2 }
 0x57f   :  { %1710 = vmatpush.bf16.msra.mxu1 %v2441_v27  ;;  %v2644_v27 = vld [vmem:[#allocation7 + $0x20] sm:$0xff] }
 0x580   :  { %1864 = vmatpush.bf16.msra.mxu2 %v2644_v27 }
 0x581   :  { %1702 = vmatpush.bf16.msrb.mxu0 %v2337_v32  ;;  %v1764_v32 = vperm.slane %v2676_v10, 3 }
 0x582   :  { %1687 = vmatpush.bf16.msra.mxu3 %v2413_v60  ;;  %v2642_v60 = vld [vmem:[#allocation7 + $0x10] sm:$0xff] }
 0x583   :  { %1711 = vmatpush.bf16.msra.mxu1 %v2433_v3  ;;  %v2640_v3 = vld [vmem:[#allocation7] sm:$0xff] }
 0x584   :  { %1865 = vmatpush.bf16.msra.mxu2 %v2643_v63 }
 0x585   :  { %1703 = vmatpush.bf16.msrb.mxu0 %v2329_v41 }
 0x586   :  { %1688 = vmatpush.bf16.msra.mxu3 %v2405_v4  ;;  %v2652_v4 = vld [vmem:[#allocation7 + $0x60] sm:$0xff] }
 0x587   :  { %1712 = vmatpush.bf16.msra.mxu1 %v2425_v15 }
 0x588   :  { %1866 = vmatpush.bf16.msra.mxu2 %v2642_v60 }
 0x58a   :  { %1689 = vmatpush.bf16.msra.mxu3 %v2397_v8  ;;  %v2648_v8 = vld [vmem:[#allocation7 + $0x40] sm:$0xff] }
 0x58b   :  { %1713 = vmatpush.bf16.msra.mxu1 %v2417_v23 }
 0x58c   :  { %1867 = vmatpush.bf16.msra.mxu2 %v2641_v1 }
 0x58e   :  { %1690 = vmatpush.bf16.msra.mxu3 %v2389_v12 }
 0x58f   :  { %1714 = vmatpush.bf16.msra.mxu1 %v2409_v51 }
 0x590   :  { %1868 = vmatpush.bf16.msra.mxu2 %v2640_v3 }
 0x591   :  { %1691 = vmatmul.bf16.vlgmr.msra.gmra.mxu3 %v1509_v14 }
 0x592   :  { %1874 = vmatpush.bf16.msrb.mxu3 %v2655_v52 }
 0x593   :  { %1715 = vmatpush.bf16.msra.mxu1 %v2401_v37 }
 0x596   :  { %1875 = vmatpush.bf16.msrb.mxu3 %v2654_v62 }
 0x597   :  { %1716 = vmatpush.bf16.msra.mxu1 %v2393_v43 }
 0x59a   :  { %1876 = vmatpush.bf16.msrb.mxu3 %v2653_v2 }
 0x59e   :  { %1877 = vmatpush.bf16.msrb.mxu3 %v2652_v4 }
 0x5bd   :  { %v1363_v49 = vpop.f32.mrf.mxu0 }
 0x5be   :  { %v1404_v9 = vadd.f32 %v3514_v61, %v1363_v49  ;;  %v1725_v61 = vperm.slane %v2677_v25, 2 }
 0x5c5   :  { %v1365_v56 = vpop.f32.mrf.mxu0 }
 0x5ef   :  { %v1376_v50 = vpop.f32.mrf.mxu1 }
 0x5f0   :  { %v1332_v44 = vpop.f32.mrf.mxu3 }
 0x5f1   :  { %v1424_v45 = vpack.c.bf16 %v1332_v44, %v1332_v44 }
 0x5f3   :  { %2320 = vmatmul.msk.bf16.vlgmr.msra.gmra.mxu0 %vm1295_vm10, %v1424_v45  ;;  %2321 = vmatmul.msk.bf16.vlgmr.msrb.gmra.mxu1 %vm1295_vm10, %v1424_v45 }
 0x5f7   :  { %v1378_v58 = vpop.f32.mrf.mxu1 }
 0x5f8   :  { %v1334_v34 = vpop.f32.mrf.mxu3 }
 0x600   :  { %v1416_v55 = vpop.f32.mrf.mxu3 }
 0x601   :  { %v1417_v57 = vadd.f32 %v1416_v55, %v1376_v50 }
 0x603   :  { %1704 = vmatmul.bf16.vlgmr.msrb.gmra.mxu0 %v3508_v33  ;;  %1717 = vmatmul.bf16.vlgmr.msra.gmra.mxu1 %v1509_v14  ;;  %v2651_v33 = vld [vmem:[#allocation7 + $0x58] sm:$0xff] }
 0x604   :  { %1878 = vmatpush.bf16.msrb.mxu3 %v2651_v33 }
 0x608   :  { %v1418_v47 = vpop.f32.mrf.mxu3  ;;  %1879 = vmatpush.bf16.msrb.mxu3 %v2650_v6 }
 0x60c   :  { %1880 = vmatpush.bf16.msrb.mxu3 %v2649_v11 }
 0x610   :  { %1881 = vmatpush.bf16.msrb.mxu3 %v2648_v8 }
 0x614   :  { %v1692_v0 = vpop.f32.mrf.mxu3 }
 0x615   :  { %v1693_v14 = vadd.f32 %v1692_v0, %v3530_v20 }
 0x61c   :  { %v1694_v59 = vpop.f32.mrf.mxu3 }
 0x670   :  { %v1457_v5 = vpop.f32.mrf.mxu0  ;;  %v1470_v12 = vpop.f32.mrf.mxu1 }
 0x671   :  { %v1474_v13 = vadd.f32 %v1457_v5, %v1404_v9  ;;  %v1475_v23 = vadd.f32 %v1470_v12, %v1417_v57 }
 0x673   :  { %v1722_v16 = vadd.f32 %v1693_v14, %v1474_v13 }
 0x675   :  { %v1726_v17 = vadd.f32 %v1724_v46, %v1722_v16 }
 0x677   :  { %v1728_v15 = vmax.f32 %v1726_v17, 0.0 }
 0x678   :  { %v1459_v48 = vpop.f32.mrf.mxu0  ;;  %v1472_v18 = vpop.f32.mrf.mxu1 }
 0x679   :  { %v1762_v21 = vpack.c.bf16 %v1728_v15, %v1728_v15 }
 0x67b   :  { %1869 = vmatmul.bf16.vlgmr.msra.gmra.mxu2 %v1762_v21 }
 0x680   :  { %v1705_v19 = vpop.f32.mrf.mxu0  ;;  %v1718_v22 = vpop.f32.mrf.mxu1 }
 0x681   :  { %v1719_v24 = vadd.f32 %v1718_v22, %v1705_v19 }
 0x683   :  { %v1723_v7 = vadd.f32 %v1719_v24, %v1475_v23 }
 0x685   :  { %v1727_v26 = vadd.f32 %v1725_v61, %v1723_v7 }
 0x687   :  { %v1729_v28 = vmax.f32 %v1727_v26, 0.0 }
 0x688   :  { %v1707_v20 = vpop.f32.mrf.mxu0  ;;  %v1720_v51 = vpop.f32.mrf.mxu1 }
 0x689   :  { %v1763_v29 = vpack.c.bf16 %v1729_v28, %v1729_v28 }
 0x68b   :  { %1882 = vmatmul.bf16.vlgmr.msrb.gmra.mxu3 %v1763_v29 }
 0x6fe   :  { %v1870_v30 = vpop.f32.mrf.mxu2 }
 0x6ff   :  { %v1871_v36 = vadd.f32 %v1870_v30, %v1764_v32 }
 0x706   :  { %v1872_v31 = vpop.f32.mrf.mxu2 }
 0x70e   :  { %v1883_v37 = vpop.f32.mrf.mxu3 }
 0x70f   :  { %v1884_v38 = vadd.f32 %v1883_v37, %v1871_v36 }
 0x711   :  { %1887 = vst [vmem:[#allocation11] sm:$0x3] %v1884_v38 }
 0x712   :  { %1911 = dma.vmem_to_hbm [thread:$0]  %s1907_s20, 32, %s1909_s27, [#allocation12]  }
 0x716   :  { %v1885_v39 = vpop.f32.mrf.mxu3 }
 0x717   :  { %2828 = dma.done.wait [#allocation4], 32  }
 0x718   :  { %2829 = vsyncadd [#allocation4], 4294967264 }
 0x719   :  { %2830 = dma.done.wait [#allocation12], 32  }
 0x71a   :  { %2831 = vsyncadd [#allocation12], 4294967264 }
 0x71b   :  { %1922 = vsyncpa [#allocation3], 1 }
 0x71c   :  { %1923 = vsyncpa [#allocation6], 1 }
 0x71d   :  { %1924 = vsyncpa [#allocation9], 1 }
 0x71e   :  { %1925 = vsyncpa [#allocation4], 1 }
 0x71f   :  { %1926 = vsyncpa [#allocation12], 1 }

</bundles_post_ra>
